<compile_context>
chip_gen: v6e
topology: v6e:2x2x1
jax: 0.10.0
libtpu: 0.0.40
codegen_flags: <defaults>
</compile_context>

<pallas_src>
import jax
import jax.numpy as jnp
from jax.experimental import pallas as pl
from jax.experimental.pallas import tpu as pltpu

NUM_CLASSES = 8
NUM_CLASSES_PAD = 128      # lane-dense output slab; real logits in lanes [0, 8)
VIT_DIM = 768              # ViT-B/16 feature dim
AST_DIM = 768              # AST hidden size (fallback value in the module)
FUSION_HIDDEN = 512
MAX_K_TILE = 2048          # audio reduction (n_mels*T) tile width
MAX_B_TILE = 256           # batch tile (fills the 256-wide MXU M dim)


def _round_up(x, m):
    return (x + m - 1) // m * m


def _cdiv(a, b):
    return (a + b - 1) // b


def _mm_classifier_kernel(img_ref, aud_ref, wv1_ref, wa1_ref, b1_ref,
                          w2_ref, b2_ref, out_ref, acc_ref):
    """grid = (batch_tiles, audio_k_tiles); axis 1 is the reduction axis."""
    k = pl.program_id(1)

    # k == 0: initialize the f32 accumulator with the vision partial matmul
    # (linear ViT stand-in already folded into fusion layer 1).
    @pl.when(k == 0)
    def _():
        acc_ref[...] = jnp.dot(img_ref[...].astype(jnp.bfloat16), wv1_ref[...],
                               preferred_element_type=jnp.float32)

    # Audio partial matmul: temporal mean + AST stand-in + fusion layer 1 are
    # all folded into wa1_flat, so this is one lane-dense MXU matmul per K tile.
    acc_ref[...] += jnp.dot(aud_ref[...].astype(jnp.bfloat16), wa1_ref[...],
                            preferred_element_type=jnp.float32)

    # k == last: bias -> ReLU -> Dropout(eval = identity) -> Linear -> store.
    @pl.when(k == pl.num_programs(1) - 1)
    def _():
        h = jnp.maximum(acc_ref[...] + b1_ref[...], 0.0)            # [tb, 512]
        logits = jnp.dot(h.astype(jnp.bfloat16), w2_ref[...],
                         preferred_element_type=jnp.float32) + b2_ref[...]
        out_ref[...] = logits.astype(out_ref.dtype)                  # [tb, 128]


def prepare_fused_params(params, T):
    """Fold the linear backbone stand-ins (and the 1/T temporal mean) into
    fusion layer 1, pad the class dim to 128 lanes, cast weights to bf16
    (biases stay f32).  Only valid while the backbones are linear stand-ins.
    """
    wv, wa, w1, b1, w2, b2 = params
    wv1 = wv.astype(jnp.float32) @ w1[:VIT_DIM].astype(jnp.float32)    # [768, 512]
    wa1 = wa.astype(jnp.float32) @ w1[VIT_DIM:].astype(jnp.float32)    # [n_mels, 512]
    # Row-major flatten of audio [n_mels, T] puts element (m, t) at row m*T+t,
    # so the mean-folded flat weight is repeat(wa1 / T, T, axis=0)
    # (== kron(wa1 / T, ones((T, 1)))).
    wa1_flat = jnp.repeat(wa1 / jnp.float32(T), T, axis=0)             # [n_mels*T, 512]
    w2p = jnp.pad(w2, ((0, 0), (0, NUM_CLASSES_PAD - NUM_CLASSES)))    # [512, 128]
    b2p = jnp.pad(b2, ((0, 0), (0, NUM_CLASSES_PAD - NUM_CLASSES)))    # [1, 128]
    return (wv1.astype(jnp.bfloat16), wa1_flat.astype(jnp.bfloat16),
            b1.astype(jnp.float32), w2p.astype(jnp.bfloat16),
            b2p.astype(jnp.float32))


def multimodal_classifier_forward(x_img, x_audio, fused_params):
    """x_img: [B, 3, 16, 16] NCHW; x_audio: [B, 1, n_mels, T].  Activations are
    passed to the kernel in the caller's dtype (f32 or bf16) — no wrapper cast."""
    B = x_img.shape[0]
    n_mels, T = x_audio.shape[2], x_audio.shape[3]
    K_flat = n_mels * T

    # --- glue (reshapes only; row-major flatten matches the weight fold) ---
    img_flat = x_img.reshape(B, -1)                                   # [B, 768]
    aud_flat = x_audio[:, 0, :, :].reshape(B, -1)                     # [B, n_mels*T]

    wv1, wa1_flat, b1, w2p, b2p = fused_params
    assert img_flat.shape[1] == VIT_DIM
    assert wa1_flat.shape[0] == K_flat

    # --- batch tiling ---
    tile_b = min(MAX_B_TILE, _round_up(B, 8))
    n_b = _cdiv(B, tile_b)
    if n_b > 1 and n_b % 2 == 1:
        # v7x megacore: an even number of batch steps keeps both TensorCores
        # busy when the "parallel" axis is sharded across cores.
        n_b += 1
        tile_b = _round_up(_cdiv(B, n_b), 8)
    b_pad = _round_up(B, tile_b)
    n_b = b_pad // tile_b

    # --- audio reduction (K) tiling ---
    tile_k = min(MAX_K_TILE, _round_up(K_flat, 128))
    k_pad = _round_up(K_flat, tile_k)
    n_k = k_pad // tile_k

    if b_pad != B:
        img_flat = jnp.pad(img_flat, ((0, b_pad - B), (0, 0)))
        aud_flat = jnp.pad(aud_flat, ((0, b_pad - B), (0, 0)))
    if k_pad != K_flat:
        # zero K-padding contributes nothing to the accumulation
        aud_flat = jnp.pad(aud_flat, ((0, 0), (0, k_pad - K_flat)))
        wa1_flat = jnp.pad(wa1_flat, ((0, k_pad - K_flat), (0, 0)))

    # Constant-index weight blocks stay VMEM-resident across grid steps.
    wspec = lambda shape: pl.BlockSpec(shape, lambda i, k: (0, 0))

    out = pl.pallas_call(
        _mm_classifier_kernel,
        out_shape=jax.ShapeDtypeStruct((b_pad, NUM_CLASSES_PAD), jnp.float32),
        grid=(n_b, n_k),
        in_specs=[
            pl.BlockSpec((tile_b, VIT_DIM), lambda i, k: (i, 0)),       # image
            pl.BlockSpec((tile_b, tile_k), lambda i, k: (i, k)),        # audio (lane-dense)
            wspec((VIT_DIM, FUSION_HIDDEN)),                            # Wv @ W1[:768]
            pl.BlockSpec((tile_k, FUSION_HIDDEN), lambda i, k: (k, 0)), # (Wa @ W1[768:]) / T, flattened
            wspec((1, FUSION_HIDDEN)),                                  # b1
            wspec((FUSION_HIDDEN, NUM_CLASSES_PAD)),                    # W2 (lane-padded)
            wspec((1, NUM_CLASSES_PAD)),                                # b2 (lane-padded)
        ],
        out_specs=pl.BlockSpec((tile_b, NUM_CLASSES_PAD), lambda i, k: (i, 0)),
        scratch_shapes=[pltpu.VMEM((tile_b, FUSION_HIDDEN), jnp.float32)],
        compiler_params=pltpu.CompilerParams(
            dimension_semantics=("parallel", "arbitrary")),
    )(img_flat, aud_flat, wv1, wa1_flat, b1, w2p, b2p)
    return out[:B, :NUM_CLASSES]


def init_params(key, n_mels):
    """Deterministic parameter init (PyTorch-style uniform(-1/sqrt(fan_in)))."""
    ks = jax.random.split(key, 6)

    def unif(k, shape, fan_in):
        bound = 1.0 / jnp.sqrt(jnp.float32(fan_in))
        return jax.random.uniform(k, shape, jnp.float32, -bound, bound)

    wv = unif(ks[0], (VIT_DIM, VIT_DIM), VIT_DIM)                     # vision stub proj
    wa = unif(ks[1], (n_mels, AST_DIM), n_mels)                       # audio stub proj
    w1 = unif(ks[2], (VIT_DIM + AST_DIM, FUSION_HIDDEN), VIT_DIM + AST_DIM)
    b1 = unif(ks[3], (1, FUSION_HIDDEN), VIT_DIM + AST_DIM)
    w2 = unif(ks[4], (FUSION_HIDDEN, NUM_CLASSES), FUSION_HIDDEN)
    b2 = unif(ks[5], (1, NUM_CLASSES), FUSION_HIDDEN)
    return (wv, wa, w1, b1, w2, b2)


def _reference_forward(x_img, x_audio, params):
    """Pure-JAX f32 reference of the stand-in backbones + fusion head."""
    wv, wa, w1, b1, w2, b2 = params
    B = x_img.shape[0]
    img_feat = x_img.reshape(B, -1).astype(jnp.float32) @ wv            # [B, 768]
    aud_feat = jnp.mean(x_audio[:, 0].astype(jnp.float32), axis=-1) @ wa  # [B, 768]
    comb = jnp.concatenate([img_feat, aud_feat], axis=1)                # [B, 1536]
    h = jnp.maximum(comb @ w1 + b1, 0.0)                                # Dropout(eval) = identity
    return h @ w2 + b2


if __name__ == "__main__":
    key = jax.random.PRNGKey(0)
    k_img, k_aud, k_par = jax.random.split(key, 3)

    B, C, H, W = 2, 3, 16, 16          # 3*16*16 == 768 flattened
    n_mels, T = 128, 8

    x_img = jax.random.normal(k_img, (B, C, H, W), jnp.float32)         # NCHW
    x_audio = jax.random.normal(k_aud, (B, 1, n_mels, T), jnp.float32)

    # TODO(synk): pretrained ViT-B/16 and AST backbones are external checkpoints
    # replaced by deterministic linear stand-ins folded into the fusion head;
    # only the fusion head matches the reference module exactly.
    params = init_params(k_par, n_mels)
    fused_params = prepare_fused_params(params, T)    # one-time weight prep (bf16)

    logits = multimodal_classifier_forward(x_img, x_audio, fused_params)
    jax.block_until_ready(logits)
    assert logits.shape == (B, NUM_CLASSES)

    # Tolerance check vs. a pure-JAX f32 reference (bf16 weight/activation drift).
    ref = _reference_forward(x_img, x_audio, params)
    assert jnp.allclose(logits, ref, atol=5e-2, rtol=5e-2), "mismatch vs f32 reference"

    print("KERNEL_OK")
</pallas_src>

<mosaic_0001>
module attributes {stable_mosaic.version = 11 : i64} {
  func.func @_mm_classifier_kernel(%arg0: i32, %arg1: i32, %arg2: memref<8x768xf32, #tpu.memory_space<vmem>>, %arg3: memref<8x1024xf32, #tpu.memory_space<vmem>>, %arg4: memref<768x512xbf16, #tpu.memory_space<vmem>>, %arg5: memref<1024x512xbf16, #tpu.memory_space<vmem>>, %arg6: memref<1x512xf32, #tpu.memory_space<vmem>>, %arg7: memref<512x128xbf16, #tpu.memory_space<vmem>>, %arg8: memref<1x128xf32, #tpu.memory_space<vmem>>, %arg9: memref<8x128xf32, #tpu.memory_space<vmem>>, %arg10: memref<8x512xf32, #tpu.memory_space<vmem>>) attributes {dimension_semantics = [#tpu.dimension_semantics<parallel>, #tpu.dimension_semantics<arbitrary>], iteration_bounds = array<i64: 1, 1>, scalar_prefetch = 0 : i64, scratch_operands = 1 : i64, tpu.core_type = #tpu.core_type<tc>, window_params = [{transform_indices = @transform_0, window_bounds = array<i64: 8, 768>}, {transform_indices = @transform_1, window_bounds = array<i64: 8, 1024>}, {pipeline_mode = #tpu.pipeline_mode<synchronous>, transform_indices = @transform_2, window_bounds = array<i64: 768, 512>}, {transform_indices = @transform_3, window_bounds = array<i64: 1024, 512>}, {pipeline_mode = #tpu.pipeline_mode<synchronous>, transform_indices = @transform_4, window_bounds = array<i64: 1, 512>}, {pipeline_mode = #tpu.pipeline_mode<synchronous>, transform_indices = @transform_5, window_bounds = array<i64: 512, 128>}, {pipeline_mode = #tpu.pipeline_mode<synchronous>, transform_indices = @transform_6, window_bounds = array<i64: 1, 128>}, {transform_indices = @transform_7, window_bounds = array<i64: 8, 128>}]} {
    %c0_i32 = arith.constant 0 : i32
    %0 = arith.cmpi eq, %arg1, %c0_i32 : i32
    %1 = arith.extui %0 : i1 to i32
    %c0_i32_0 = arith.constant 0 : i32
    %2 = arith.cmpi ne, %1, %c0_i32_0 : i32
    scf.if %2 {
      %c0_10 = arith.constant 0 : index
      %c0_11 = arith.constant 0 : index
      %13 = vector.load %arg2[%c0_10, %c0_11] : memref<8x768xf32, #tpu.memory_space<vmem>>, vector<8x768xf32>
      %14 = arith.truncf %13 : vector<8x768xf32> to vector<8x768xbf16>
      %c0_12 = arith.constant 0 : index
      %c0_13 = arith.constant 0 : index
      %15 = vector.load %arg4[%c0_12, %c0_13] : memref<768x512xbf16, #tpu.memory_space<vmem>>, vector<768x512xbf16>
      %cst_14 = arith.constant dense<0.000000e+00> : vector<8x512xf32>
      %16 = tpu.matmul %14, %15, %cst_14 {dimension_numbers = #tpu.dot_dimension_numbers<[1], [0], [0], [1], [0, 0, 1, 1], [], []>} : vector<8x768xbf16>, vector<768x512xbf16>, vector<8x512xf32> -> vector<8x512xf32>
      %c0_15 = arith.constant 0 : index
      %c0_16 = arith.constant 0 : index
      %17 = vector.load %arg10[%c0_15, %c0_16] : memref<8x512xf32, #tpu.memory_space<vmem>>, vector<8x512xf32>
      tpu.vector_store %arg10[%c0_15, %c0_16], %16 {strides = array<i32>} : memref<8x512xf32, #tpu.memory_space<vmem>>, vector<8x512xf32>,
    } else {
    }
    %c0 = arith.constant 0 : index
    %c0_1 = arith.constant 0 : index
    %3 = vector.load %arg10[%c0, %c0_1] : memref<8x512xf32, #tpu.memory_space<vmem>>, vector<8x512xf32>
    %c0_2 = arith.constant 0 : index
    %c0_3 = arith.constant 0 : index
    %4 = vector.load %arg3[%c0_2, %c0_3] : memref<8x1024xf32, #tpu.memory_space<vmem>>, vector<8x1024xf32>
    %5 = arith.truncf %4 : vector<8x1024xf32> to vector<8x1024xbf16>
    %c0_4 = arith.constant 0 : index
    %c0_5 = arith.constant 0 : index
    %6 = vector.load %arg5[%c0_4, %c0_5] : memref<1024x512xbf16, #tpu.memory_space<vmem>>, vector<1024x512xbf16>
    %cst = arith.constant dense<0.000000e+00> : vector<8x512xf32>
    %7 = tpu.matmul %5, %6, %cst {dimension_numbers = #tpu.dot_dimension_numbers<[1], [0], [0], [1], [0, 0, 1, 1], [], []>} : vector<8x1024xbf16>, vector<1024x512xbf16>, vector<8x512xf32> -> vector<8x512xf32>
    %8 = arith.addf %3, %7 : vector<8x512xf32>
    %c0_6 = arith.constant 0 : index
    %c0_7 = arith.constant 0 : index
    %9 = vector.load %arg10[%c0_6, %c0_7] : memref<8x512xf32, #tpu.memory_space<vmem>>, vector<8x512xf32>
    tpu.vector_store %arg10[%c0_6, %c0_7], %8 {strides = array<i32>} : memref<8x512xf32, #tpu.memory_space<vmem>>, vector<8x512xf32>,
    %c0_i32_8 = arith.constant 0 : i32
    %10 = arith.cmpi eq, %arg1, %c0_i32_8 : i32
    %11 = arith.extui %10 : i1 to i32
    %c0_i32_9 = arith.constant 0 : i32
    %12 = arith.cmpi ne, %11, %c0_i32_9 : i32
    scf.if %12 {
      %c0_10 = arith.constant 0 : index
      %c0_11 = arith.constant 0 : index
      %13 = vector.load %arg10[%c0_10, %c0_11] : memref<8x512xf32, #tpu.memory_space<vmem>>, vector<8x512xf32>
      %c0_12 = arith.constant 0 : index
      %c0_13 = arith.constant 0 : index
      %14 = vector.load %arg6[%c0_12, %c0_13] : memref<1x512xf32, #tpu.memory_space<vmem>>, vector<1x512xf32>
      %15 = vector.broadcast %14 : vector<1x512xf32> to vector<8x512xf32>
      %16 = arith.addf %13, %15 : vector<8x512xf32>
      %cst_14 = arith.constant 0.000000e+00 : f32
      %17 = vector.broadcast %cst_14 : f32 to vector<8x512xf32>
      %18 = arith.maximumf %16, %17 : vector<8x512xf32>
      %19 = arith.truncf %18 : vector<8x512xf32> to vector<8x512xbf16>
      %c0_15 = arith.constant 0 : index
      %c0_16 = arith.constant 0 : index
      %20 = vector.load %arg7[%c0_15, %c0_16] : memref<512x128xbf16, #tpu.memory_space<vmem>>, vector<512x128xbf16>
      %cst_17 = arith.constant dense<0.000000e+00> : vector<8x128xf32>
      %21 = tpu.matmul %19, %20, %cst_17 {dimension_numbers = #tpu.dot_dimension_numbers<[1], [0], [0], [1], [0, 0, 1, 1], [], []>} : vector<8x512xbf16>, vector<512x128xbf16>, vector<8x128xf32> -> vector<8x128xf32>
      %c0_18 = arith.constant 0 : index
      %c0_19 = arith.constant 0 : index
      %22 = vector.load %arg8[%c0_18, %c0_19] : memref<1x128xf32, #tpu.memory_space<vmem>>, vector<1x128xf32>
      %23 = vector.broadcast %22 : vector<1x128xf32> to vector<8x128xf32>
      %24 = arith.addf %21, %23 : vector<8x128xf32>
      %c0_20 = arith.constant 0 : index
      %c0_21 = arith.constant 0 : index
      %25 = vector.load %arg9[%c0_20, %c0_21] : memref<8x128xf32, #tpu.memory_space<vmem>>, vector<8x128xf32>
      tpu.vector_store %arg9[%c0_20, %c0_21], %24 {strides = array<i32>} : memref<8x128xf32, #tpu.memory_space<vmem>>, vector<8x128xf32>,
    } else {
    }
    return
  }
  func.func @transform_0(%arg0: i32, %arg1: i32) -> (i32, i32) {
    %c0_i32 = arith.constant 0 : i32
    %c0_i32_0 = arith.constant 0 : i32
    return %arg0, %c0_i32 : i32, i32
  }
  func.func @transform_1(%arg0: i32, %arg1: i32) -> (i32, i32) {
    %c0_i32 = arith.constant 0 : i32
    return %arg0, %arg1 : i32, i32
  }
  func.func @transform_2(%arg0: i32, %arg1: i32) -> (i32, i32) {
    %c0_i32 = arith.constant 0 : i32
    %c0_i32_0 = arith.constant 0 : i32
    %c0_i32_1 = arith.constant 0 : i32
    return %c0_i32, %c0_i32_0 : i32, i32
  }
  func.func @transform_3(%arg0: i32, %arg1: i32) -> (i32, i32) {
    %c0_i32 = arith.constant 0 : i32
    %c0_i32_0 = arith.constant 0 : i32
    return %arg1, %c0_i32 : i32, i32
  }
  func.func @transform_4(%arg0: i32, %arg1: i32) -> (i32, i32) {
    %c0_i32 = arith.constant 0 : i32
    %c0_i32_0 = arith.constant 0 : i32
    %c0_i32_1 = arith.constant 0 : i32
    return %c0_i32, %c0_i32_0 : i32, i32
  }
  func.func @transform_5(%arg0: i32, %arg1: i32) -> (i32, i32) {
    %c0_i32 = arith.constant 0 : i32
    %c0_i32_0 = arith.constant 0 : i32
    %c0_i32_1 = arith.constant 0 : i32
    return %c0_i32, %c0_i32_0 : i32, i32
  }
  func.func @transform_6(%arg0: i32, %arg1: i32) -> (i32, i32) {
    %c0_i32 = arith.constant 0 : i32
    %c0_i32_0 = arith.constant 0 : i32
    %c0_i32_1 = arith.constant 0 : i32
    return %c0_i32, %c0_i32_0 : i32, i32
  }
  func.func @transform_7(%arg0: i32, %arg1: i32) -> (i32, i32) {
    %c0_i32 = arith.constant 0 : i32
    %c0_i32_0 = arith.constant 0 : i32
    return %arg0, %c0_i32 : i32, i32
  }
}

</mosaic_0001>

<bundles_post_ra>
// kernel: tpu_custom_call.1
= control target key start
LH: loop header
LB: loop body
LE: loop exit
PB: predicated region body
PF: predicated region fallthrough
CT: control target
= control target key end

     0   :  { %12 = vsyncpa [#allocation4], 0  ;;  %s5337_s0 = inlined_call_operand.hbm [shape: f32[8,768], index: 0, kind: input, shape index: {}]   ;;  %s5338_s1 = inlined_call_operand.hbm [shape: f32[8,1024], index: 1, kind: input, shape index: {}]   ;;  %s5339_s2 = inlined_call_operand.hbm [shape: bf16[768,512], index: 2, kind: input, shape index: {}]   ;;  %s5340_s3 = inlined_call_operand.hbm [shape: bf16[1024,512], index: 3, kind: input, shape index: {}]   ;;  %s5341_s4 = inlined_call_operand.vmem [shape: f32[1,512], index: 4, kind: input, shape index: {}]   ;;  %s5342_s5 = inlined_call_operand.hbm [shape: bf16[512,128], index: 5, kind: input, shape index: {}]   ;;  %s5343_s6 = inlined_call_operand.vmem [shape: f32[1,128], index: 6, kind: input, shape index: {}]   ;;  %s5344_s7 = inlined_call_operand.hbm [shape: f32[8,128], index: 7, kind: output, shape index: {}]  }
   0x1   :  { %13 = vsyncpa [#allocation7], 0 }
   0x2   :  { %14 = vsyncpa [#allocation10], 0 }
   0x3   :  { %15 = vsyncpa [#allocation5], 0  ;;  %s5171_s24 = smov [#allocation6]  }
   0x4   :  { %s32_s25 = sshll.u32 %s5171_s24, 4  ;;  %s33_s25 = int_to_ptr.vmem [resolvable:$true] %s32_s25 }
   0x5   :  { %s5051_s26 = scalar_lea.vmem %s33_s25, 1024  ;;  %p5056_p1 = scmp.lt.s32.totalorder %s33_s25, %s33_s25 }
   0x6   :  { %p5052_p0 = scmp.ne.s32.totalorder %s33_s25, %s5051_s26  ;;  %p5057_p2 = scmp.lt.s32.totalorder %s5051_s26, %s5051_s26 }
   0x8   :  { %p5058_p3 = por %p5057_p2, %p5056_p1 }
   0xa   :  { %p5059_p4 = pnand %p5058_p3, %p5052_p0 }
   0xc   :  { %5062 = shalt.err (!%p5059_p4)
}
   0xd   :  { %35 = dma.hbm_to_vmem [thread:$0]  %s5338_s1, 1024, %s33_s25, [#allocation7]  }
   0xe   :  { %s5172_s29 = smov [#allocation9]   ;;  %s5173_s8 = smov [#allocation3]  }
   0xf   :  { %s53_s30 = sshll.u32 %s5172_s29, 4  ;;  %s22_s9 = sshll.u32 %s5173_s8, 4  ;;  %s54_s30 = int_to_ptr.vmem [resolvable:$true] %s53_s30  ;;  %s23_s9 = int_to_ptr.vmem [resolvable:$true] %s22_s9 }
  0x10   :  { %s5071_s10 = scalar_lea.vmem %s54_s30, 32768  ;;  %p5076_p6 = scmp.lt.s32.totalorder %s54_s30, %s54_s30 }
  0x11   :  { %p5072_p5 = scmp.ne.s32.totalorder %s54_s30, %s5071_s10  ;;  %p5077_p7 = scmp.lt.s32.totalorder %s5071_s10, %s5071_s10 }
  0x13   :  { %p5078_p8 = por %p5077_p7, %p5076_p6 }
  0x15   :  { %p5079_p9 = pnand %p5078_p8, %p5072_p5 }
  0x17   :  { %5082 = shalt.err (!%p5079_p9)
}
  0x18   :  { %s5174_s11 = smov 256   ;;  %s5175_s12 = smov 16  }
  0x19   :  { %59 = dma.hbm_to_vmem [thread:$0]  %s5340_s3, 32768, %s54_s30, [#allocation10], %s5174_s11, %s5174_s11, %s5175_s12  }
  0x1a   :  { %s5091_s1 = scalar_lea.vmem %s23_s9, 768  ;;  %p5096_p11 = scmp.lt.s32.totalorder %s23_s9, %s23_s9 }
  0x1b   :  { %p5092_p10 = scmp.ne.s32.totalorder %s23_s9, %s5091_s1  ;;  %p5097_p12 = scmp.lt.s32.totalorder %s5091_s1, %s5091_s1 }
  0x1d   :  { %p5098_p13 = por %p5097_p12, %p5096_p11 }
  0x1f   :  { %p5099_p0 = pnand %p5098_p13, %p5092_p10 }
  0x21   :  { %5102 = shalt.err (!%p5099_p0)
}
  0x22   :  { %25 = dma.hbm_to_vmem [thread:$0]  %s5337_s0, 768, %s23_s9, [#allocation4]  }
  0x23   :  { %s5176_s17 = smov [#allocation8]   ;;  %s5177_s19 = smov [#allocation11]  }
  0x24   :  { %s41_s18 = sshll.u32 %s5176_s17, 4  ;;  %s67_s20 = sshll.u32 %s5177_s19, 4  ;;  %s42_s18 = int_to_ptr.vmem [resolvable:$true] %s41_s18  ;;  %s68_s20 = int_to_ptr.vmem [resolvable:$true] %s67_s20 }
  0x25   :  { %s5111_s21 = scalar_lea.vmem %s42_s18, 24576  ;;  %p5116_p2 = scmp.lt.s32.totalorder %s42_s18, %s42_s18 }
  0x26   :  { %p5112_p1 = scmp.ne.s32.totalorder %s42_s18, %s5111_s21  ;;  %p5117_p3 = scmp.lt.s32.totalorder %s5111_s21, %s5111_s21 }
  0x28   :  { %p5118_p4 = por %p5117_p3, %p5116_p2 }
  0x2a   :  { %p5119_p5 = pnand %p5118_p4, %p5112_p1 }
  0x2c   :  { %5122 = shalt.err (!%p5119_p5)
}
  0x2d   :  { %47 = dma.hbm_to_vmem [thread:$0]  %s5339_s2, 24576, %s42_s18, [#allocation7], %s5174_s11, %s5174_s11, %s5175_s12  }
  0x2e   :  { %s5131_s23 = scalar_lea.vmem %s68_s20, 4096  ;;  %p5136_p7 = scmp.lt.s32.totalorder %s68_s20, %s68_s20 }
  0x2f   :  { %p5132_p6 = scmp.ne.s32.totalorder %s68_s20, %s5131_s23  ;;  %p5137_p8 = scmp.lt.s32.totalorder %s5131_s23, %s5131_s23 }
  0x31   :  { %p5138_p9 = por %p5137_p8, %p5136_p7 }
  0x33   :  { %p5139_p10 = pnand %p5138_p9, %p5132_p6 }
  0x35   :  { %5142 = shalt.err (!%p5139_p10)
}
  0x36   :  { %s5178_s0 = smov 64   ;;  %s5179_s24 = smov 4  }
  0x37   :  { %73 = dma.hbm_to_vmem [thread:$0]  %s5342_s5, 4096, %s68_s20, [#allocation10], %s5178_s0, %s5178_s0, %s5179_s24  }
  0x38   :  { %5163 = dma.done.wait [#allocation4], 768  }
  0x39   :  { %5164 = vsyncadd [#allocation4], 4294966528 }
  0x3a   :  { %5165 = dma.done.wait [#allocation7], 25600  }
  0x3b   :  { %5166 = vsyncadd [#allocation7], 4294941696 }
  0x3c   :  { %5167 = dma.done.wait [#allocation10], 36864  }
  0x3d   :  { %5168 = vsyncadd [#allocation10], 4294930432  ;;  %v4339_v0 = vld [vmem:[#allocation8 + $0xe4] ss:$16 sps:$4 sm:$0xff]   ;;  %v4343_v2 = vld [vmem:[#allocation8 + $0xe0] ss:$16 sps:$4 sm:$0xff]  }
  0x3e   :  { %v4341_v1 = vld [vmem:[#allocation8 + $0x2e4] ss:$16 sps:$4 sm:$0xff]   ;;  %1260 = vmatprep.subr.bf16.mxu0 %v4339_v0  ;;  %v4344_v3 = vld [vmem:[#allocation8 + $0x2e0] ss:$16 sps:$4 sm:$0xff]   ;;  %v97_v46 = vld [vmem:[#allocation3 + $0x8] sm:$0xff]  ;;  %s5180_s28 = smov [#allocation12]  }
  0x3f   :  { %1301 = vmatprep.subr.bf16.mxu1 %v4341_v1  ;;  %v4345_v4 = vld [vmem:[#allocation8 + $0xc4] ss:$16 sps:$4 sm:$0xff]   ;;  %1261 = vmatpush1.bf16.msra.mxu0 %v4343_v2  ;;  %v4349_v6 = vld [vmem:[#allocation8 + $0xc0] ss:$16 sps:$4 sm:$0xff]   ;;  %v5236_v49 = vpack.c.bf16 %v97_v46, %v97_v46  ;;  %v99_v50 = vld [vmem:[#allocation3 + $0x18] sm:$0xff]  ;;  %s3793_s29 = sshll.u32 %s5180_s28, 4  ;;  %s3794_s29 = int_to_ptr.vmem [resolvable:$true] %s3793_s29 }
  0x40   :  { %1302 = vmatpush1.bf16.msra.mxu1 %v4344_v3  ;;  %v4347_v5 = vld [vmem:[#allocation8 + $0x2c4] ss:$16 sps:$4 sm:$0xff]   ;;  %1262 = vmatprep.subr.bf16.mxu0 %v4345_v4  ;;  %v4350_v7 = vld [vmem:[#allocation8 + $0x2c0] ss:$16 sps:$4 sm:$0xff]   ;;  %v5238_v52 = vpack.c.bf16 %v99_v50, %v99_v50  ;;  %s5143_s30 = scalar_lea.vmem %s3794_s29, 128  ;;  %p5148_p12 = scmp.lt.s32.totalorder %s3794_s29, %s3794_s29 }
  0x41   :  { %1303 = vmatprep.subr.bf16.mxu1 %v4347_v5  ;;  %v4351_v8 = vld [vmem:[#allocation8 + $0xa4] ss:$16 sps:$4 sm:$0xff]   ;;  %v4355_v10 = vld [vmem:[#allocation8 + $0xa0] ss:$16 sps:$4 sm:$0xff]   ;;  %1292 = vmatprep.mubr.bf16.mxu0 %v5236_v49  ;;  %p5144_p11 = scmp.ne.s32.totalorder %s3794_s29, %s5143_s30  ;;  %p5149_p13 = scmp.lt.s32.totalorder %s5143_s30, %s5143_s30 }
  0x42   :  { %v4353_v9 = vld [vmem:[#allocation8 + $0x2a4] ss:$16 sps:$4 sm:$0xff]   ;;  %v4356_v11 = vld [vmem:[#allocation8 + $0x2a0] ss:$16 sps:$4 sm:$0xff]   ;;  %1333 = vmatprep.mubr.bf16.mxu1 %v5238_v52 }
  0x43   :  { %1263 = vmatpush1.bf16.msra.mxu0 %v4349_v6  ;;  %v4357_v12 = vld [vmem:[#allocation8 + $0x84] ss:$16 sps:$4 sm:$0xff]   ;;  %v4361_v14 = vld [vmem:[#allocation8 + $0x80] ss:$16 sps:$4 sm:$0xff]   ;;  %p5150_p0 = por %p5149_p13, %p5148_p12 }
  0x44   :  { %1304 = vmatpush1.bf16.msra.mxu1 %v4350_v7  ;;  %1264 = vmatprep.subr.bf16.mxu0 %v4351_v8  ;;  %v4359_v13 = vld [vmem:[#allocation8 + $0x284] ss:$16 sps:$4 sm:$0xff]   ;;  %v4362_v15 = vld [vmem:[#allocation8 + $0x280] ss:$16 sps:$4 sm:$0xff]   ;;  %v4440_v7 = vld [vmem:[#allocation8 + $0xec] ss:$16 sps:$4 sm:$0xff]  }
  0x45   :  { %1305 = vmatprep.subr.bf16.mxu1 %v4353_v9  ;;  %v4363_v16 = vld [vmem:[#allocation8 + $0x64] ss:$16 sps:$4 sm:$0xff]   ;;  %v4367_v18 = vld [vmem:[#allocation8 + $0x60] ss:$16 sps:$4 sm:$0xff]   ;;  %p5151_p1 = pnand %p5150_p0, %p5144_p11 }
  0x46   :  { %v4365_v17 = vld [vmem:[#allocation8 + $0x264] ss:$16 sps:$4 sm:$0xff]   ;;  %v4368_v19 = vld [vmem:[#allocation8 + $0x260] ss:$16 sps:$4 sm:$0xff]  }
  0x47   :  { %1265 = vmatpush1.bf16.msra.mxu0 %v4355_v10  ;;  %v4369_v20 = vld [vmem:[#allocation8 + $0x44] ss:$16 sps:$4 sm:$0xff]   ;;  %v4373_v22 = vld [vmem:[#allocation8 + $0x40] ss:$16 sps:$4 sm:$0xff]  }
  0x48   :  { %1306 = vmatpush1.bf16.msra.mxu1 %v4356_v11  ;;  %1266 = vmatprep.subr.bf16.mxu0 %v4357_v12  ;;  %v4371_v21 = vld [vmem:[#allocation8 + $0x244] ss:$16 sps:$4 sm:$0xff]   ;;  %v4374_v23 = vld [vmem:[#allocation8 + $0x240] ss:$16 sps:$4 sm:$0xff]   ;;  %v4438_v11 = vld [vmem:[#allocation8 + $0xe8] ss:$16 sps:$4 sm:$0xff]  }
  0x49   :  { %1307 = vmatprep.subr.bf16.mxu1 %v4359_v13  ;;  %v4375_v24 = vld [vmem:[#allocation8 + $0x24] ss:$16 sps:$4 sm:$0xff]   ;;  %v4379_v26 = vld [vmem:[#allocation8 + $0x20] ss:$16 sps:$4 sm:$0xff]   ;;  %v4446_v13 = vld [vmem:[#allocation8 + $0xcc] ss:$16 sps:$4 sm:$0xff]  }
  0x4a   :  { %v4377_v25 = vld [vmem:[#allocation8 + $0x224] ss:$16 sps:$4 sm:$0xff]   ;;  %v4380_v27 = vld [vmem:[#allocation8 + $0x220] ss:$16 sps:$4 sm:$0xff]  }
  0x4b   :  { %1267 = vmatpush1.bf16.msra.mxu0 %v4361_v14  ;;  %v4381_v28 = vld [vmem:[#allocation8 + $0x4] ss:$16 sps:$4 sm:$0xff]   ;;  %v4385_v30 = vld [vmem:[#allocation8] ss:$16 sps:$4 sm:$0xff]  }
  0x4c   :  { %1308 = vmatpush1.bf16.msra.mxu1 %v4362_v15  ;;  %1268 = vmatprep.subr.bf16.mxu0 %v4363_v16  ;;  %v4383_v29 = vld [vmem:[#allocation8 + $0x204] ss:$16 sps:$4 sm:$0xff]   ;;  %v4386_v31 = vld [vmem:[#allocation8 + $0x200] ss:$16 sps:$4 sm:$0xff]   ;;  %v4444_v15 = vld [vmem:[#allocation8 + $0xc8] ss:$16 sps:$4 sm:$0xff]  }
  0x4d   :  { %1309 = vmatprep.subr.bf16.mxu1 %v4365_v17  ;;  %v4387_v32 = vld [vmem:[#allocation8 + $0x1e4] ss:$16 sps:$4 sm:$0xff]   ;;  %v4391_v34 = vld [vmem:[#allocation8 + $0x1e0] ss:$16 sps:$4 sm:$0xff]   ;;  %v4452_v17 = vld [vmem:[#allocation8 + $0xac] ss:$16 sps:$4 sm:$0xff]  }
  0x4e   :  { %v4389_v33 = vld [vmem:[#allocation8 + $0x3e4] ss:$16 sps:$4 sm:$0xff]   ;;  %v4392_v35 = vld [vmem:[#allocation8 + $0x3e0] ss:$16 sps:$4 sm:$0xff]  }
  0x4f   :  { %1269 = vmatpush1.bf16.msra.mxu0 %v4367_v18  ;;  %v4393_v36 = vld [vmem:[#allocation8 + $0x1c4] ss:$16 sps:$4 sm:$0xff]   ;;  %v4397_v38 = vld [vmem:[#allocation8 + $0x1c0] ss:$16 sps:$4 sm:$0xff]  }
  0x50   :  { %1310 = vmatpush1.bf16.msra.mxu1 %v4368_v19  ;;  %1270 = vmatprep.subr.bf16.mxu0 %v4369_v20  ;;  %v4395_v37 = vld [vmem:[#allocation8 + $0x3c4] ss:$16 sps:$4 sm:$0xff]   ;;  %v4398_v39 = vld [vmem:[#allocation8 + $0x3c0] ss:$16 sps:$4 sm:$0xff]   ;;  %v4450_v19 = vld [vmem:[#allocation8 + $0xa8] ss:$16 sps:$4 sm:$0xff]  }
  0x51   :  { %1311 = vmatprep.subr.bf16.mxu1 %v4371_v21  ;;  %v4399_v40 = vld [vmem:[#allocation8 + $0x1a4] ss:$16 sps:$4 sm:$0xff]   ;;  %v4403_v42 = vld [vmem:[#allocation8 + $0x1a0] ss:$16 sps:$4 sm:$0xff]   ;;  %v4458_v21 = vld [vmem:[#allocation8 + $0x8c] ss:$16 sps:$4 sm:$0xff]  }
  0x52   :  { %v4401_v41 = vld [vmem:[#allocation8 + $0x3a4] ss:$16 sps:$4 sm:$0xff]   ;;  %v4404_v43 = vld [vmem:[#allocation8 + $0x3a0] ss:$16 sps:$4 sm:$0xff]  }
  0x53   :  { %1271 = vmatpush1.bf16.msra.mxu0 %v4373_v22  ;;  %v4405_v44 = vld [vmem:[#allocation8 + $0x184] ss:$16 sps:$4 sm:$0xff]   ;;  %v4409_v47 = vld [vmem:[#allocation8 + $0x180] ss:$16 sps:$4 sm:$0xff]  }
  0x54   :  { %1312 = vmatpush1.bf16.msra.mxu1 %v4374_v23  ;;  %1272 = vmatprep.subr.bf16.mxu0 %v4375_v24  ;;  %v4407_v45 = vld [vmem:[#allocation8 + $0x384] ss:$16 sps:$4 sm:$0xff]   ;;  %v4410_v48 = vld [vmem:[#allocation8 + $0x380] ss:$16 sps:$4 sm:$0xff]   ;;  %v4456_v23 = vld [vmem:[#allocation8 + $0x88] ss:$16 sps:$4 sm:$0xff]  }
  0x55   :  { %1313 = vmatprep.subr.bf16.mxu1 %v4377_v25  ;;  %v4411_v51 = vld [vmem:[#allocation8 + $0x164] ss:$16 sps:$4 sm:$0xff]   ;;  %v4415_v54 = vld [vmem:[#allocation8 + $0x160] ss:$16 sps:$4 sm:$0xff]   ;;  %v4464_v25 = vld [vmem:[#allocation8 + $0x6c] ss:$16 sps:$4 sm:$0xff]  }
  0x56   :  { %v4413_v53 = vld [vmem:[#allocation8 + $0x364] ss:$16 sps:$4 sm:$0xff]   ;;  %v4416_v55 = vld [vmem:[#allocation8 + $0x360] ss:$16 sps:$4 sm:$0xff]  }
  0x57   :  { %1273 = vmatpush1.bf16.msra.mxu0 %v4379_v26  ;;  %v4417_v56 = vld [vmem:[#allocation8 + $0x144] ss:$16 sps:$4 sm:$0xff]   ;;  %v4421_v58 = vld [vmem:[#allocation8 + $0x140] ss:$16 sps:$4 sm:$0xff]  }
  0x58   :  { %1314 = vmatpush1.bf16.msra.mxu1 %v4380_v27  ;;  %1274 = vmatprep.subr.bf16.mxu0 %v4381_v28  ;;  %v4419_v57 = vld [vmem:[#allocation8 + $0x344] ss:$16 sps:$4 sm:$0xff]   ;;  %v4422_v59 = vld [vmem:[#allocation8 + $0x340] ss:$16 sps:$4 sm:$0xff]   ;;  %v4462_v27 = vld [vmem:[#allocation8 + $0x68] ss:$16 sps:$4 sm:$0xff]  }
  0x59   :  { %1315 = vmatprep.subr.bf16.mxu1 %v4383_v29  ;;  %v4423_v60 = vld [vmem:[#allocation8 + $0x124] ss:$16 sps:$4 sm:$0xff]   ;;  %v4427_v62 = vld [vmem:[#allocation8 + $0x120] ss:$16 sps:$4 sm:$0xff]   ;;  %v4470_v29 = vld [vmem:[#allocation8 + $0x4c] ss:$16 sps:$4 sm:$0xff]  }
  0x5a   :  { %v4425_v61 = vld [vmem:[#allocation8 + $0x324] ss:$16 sps:$4 sm:$0xff]   ;;  %v4428_v63 = vld [vmem:[#allocation8 + $0x320] ss:$16 sps:$4 sm:$0xff]  }
  0x5b   :  { %1275 = vmatpush1.bf16.msra.mxu0 %v4385_v30  ;;  %v4429_v0 = vld [vmem:[#allocation8 + $0x104] ss:$16 sps:$4 sm:$0xff]   ;;  %v4433_v2 = vld [vmem:[#allocation8 + $0x100] ss:$16 sps:$4 sm:$0xff]  }
  0x5c   :  { %1316 = vmatpush1.bf16.msra.mxu1 %v4386_v31  ;;  %1276 = vmatprep.subr.bf16.mxu0 %v4387_v32  ;;  %v4431_v1 = vld [vmem:[#allocation8 + $0x304] ss:$16 sps:$4 sm:$0xff]   ;;  %v4434_v3 = vld [vmem:[#allocation8 + $0x300] ss:$16 sps:$4 sm:$0xff]   ;;  %v4468_v31 = vld [vmem:[#allocation8 + $0x48] ss:$16 sps:$4 sm:$0xff]  }
  0x5d   :  { %1317 = vmatprep.subr.bf16.mxu1 %v4389_v33  ;;  %v96_v4 = vld [vmem:[#allocation3] sm:$0xff]  ;;  %v98_v5 = vld [vmem:[#allocation3 + $0x10] sm:$0xff]  ;;  %v4476_v33 = vld [vmem:[#allocation8 + $0x2c] ss:$16 sps:$4 sm:$0xff]  }
  0x5e   :  { %v4437_v6 = vld [vmem:[#allocation8 + $0x4e4] ss:$16 sps:$4 sm:$0xff]   ;;  %v5242_v8 = vpack.c.bf16 %v96_v4, %v96_v4  ;;  %v5244_v9 = vpack.c.bf16 %v98_v5, %v98_v5  ;;  %v4435_v10 = vld [vmem:[#allocation8 + $0x4e0] ss:$16 sps:$4 sm:$0xff]   ;;  %v4524_v4 = vld [vmem:[#allocation8 + $0x12c] ss:$16 sps:$4 sm:$0xff]  }
  0x5f   :  { %1277 = vmatpush2.bf16.msra.mxu0 %v4391_v34  ;;  %v4443_v12 = vld [vmem:[#allocation8 + $0x4c4] ss:$16 sps:$4 sm:$0xff]   ;;  %v4441_v14 = vld [vmem:[#allocation8 + $0x4c0] ss:$16 sps:$4 sm:$0xff]   ;;  %v101_v34 = vld [vmem:[#allocation3 + $0x28] sm:$0xff] }
  0x60   :  { %1318 = vmatpush2.bf16.msra.mxu1 %v4392_v35  ;;  %1278 = vmatprep.subr.bf16.mxu0 %v4393_v36  ;;  %v4449_v16 = vld [vmem:[#allocation8 + $0x4a4] ss:$16 sps:$4 sm:$0xff]   ;;  %v4447_v18 = vld [vmem:[#allocation8 + $0x4a0] ss:$16 sps:$4 sm:$0xff]   ;;  %v5249_v35 = vpack.c.bf16 %v101_v34, %v101_v34  ;;  %v4566_v34 = vld [vmem:[#allocation8 + $0x44c] ss:$16 sps:$4 sm:$0xff]  }
  0x61   :  { %1319 = vmatprep.subr.bf16.mxu1 %v4395_v37  ;;  %v4455_v20 = vld [vmem:[#allocation8 + $0x484] ss:$16 sps:$4 sm:$0xff]   ;;  %v4453_v22 = vld [vmem:[#allocation8 + $0x480] ss:$16 sps:$4 sm:$0xff]   ;;  %v4474_v37 = vld [vmem:[#allocation8 + $0x28] ss:$16 sps:$4 sm:$0xff]  }
  0x62   :  { %v4461_v24 = vld [vmem:[#allocation8 + $0x464] ss:$16 sps:$4 sm:$0xff]   ;;  %v4459_v26 = vld [vmem:[#allocation8 + $0x460] ss:$16 sps:$4 sm:$0xff]  }
  0x63   :  { %1279 = vmatpush2.bf16.msra.mxu0 %v4397_v38  ;;  %v4467_v28 = vld [vmem:[#allocation8 + $0x444] ss:$16 sps:$4 sm:$0xff]   ;;  %v4465_v30 = vld [vmem:[#allocation8 + $0x440] ss:$16 sps:$4 sm:$0xff]  }
  0x64   :  { %1320 = vmatpush2.bf16.msra.mxu1 %v4398_v39  ;;  %1280 = vmatprep.subr.bf16.mxu0 %v4399_v40  ;;  %v4473_v32 = vld [vmem:[#allocation8 + $0x424] ss:$16 sps:$4 sm:$0xff]   ;;  %v4471_v36 = vld [vmem:[#allocation8 + $0x420] ss:$16 sps:$4 sm:$0xff]   ;;  %v4482_v39 = vld [vmem:[#allocation8 + $0xc] ss:$16 sps:$4 sm:$0xff]  }
  0x65   :  { %1321 = vmatprep.subr.bf16.mxu1 %v4401_v41  ;;  %v4479_v38 = vld [vmem:[#allocation8 + $0x404] ss:$16 sps:$4 sm:$0xff]   ;;  %v4477_v40 = vld [vmem:[#allocation8 + $0x400] ss:$16 sps:$4 sm:$0xff]   ;;  %v4480_v41 = vld [vmem:[#allocation8 + $0x8] ss:$16 sps:$4 sm:$0xff]  }
  0x66   :  { %v4491_v46 = vld [vmem:[#allocation8 + $0x5c4] ss:$16 sps:$4 sm:$0xff]   ;;  %v4519_v5 = vld [vmem:[#allocation8 + $0x520] ss:$16 sps:$4 sm:$0xff]  }
  0x67   :  { %1281 = vmatpush2.bf16.msra.mxu0 %v4403_v42  ;;  %v4485_v42 = vld [vmem:[#allocation8 + $0x5e4] ss:$16 sps:$4 sm:$0xff]  }
  0x68   :  { %1322 = vmatpush2.bf16.msra.mxu1 %v4404_v43  ;;  %1282 = vmatprep.subr.bf16.mxu0 %v4405_v44  ;;  %v4488_v43 = vld [vmem:[#allocation8 + $0x1ec] ss:$16 sps:$4 sm:$0xff]   ;;  %v4483_v44 = vld [vmem:[#allocation8 + $0x5e0] ss:$16 sps:$4 sm:$0xff]   ;;  %v4497_v50 = vld [vmem:[#allocation8 + $0x5a4] ss:$16 sps:$4 sm:$0xff]  }
  0x69   :  { %1323 = vmatprep.subr.bf16.mxu1 %v4407_v45  ;;  %v4486_v45 = vld [vmem:[#allocation8 + $0x1e8] ss:$16 sps:$4 sm:$0xff]  }
  0x6b   :  { %1283 = vmatpush2.bf16.msra.mxu0 %v4409_v47  ;;  %v4494_v47 = vld [vmem:[#allocation8 + $0x1cc] ss:$16 sps:$4 sm:$0xff]  }
  0x6c   :  { %1324 = vmatpush2.bf16.msra.mxu1 %v4410_v48  ;;  %1284 = vmatprep.subr.bf16.mxu0 %v4411_v51  ;;  %v4489_v48 = vld [vmem:[#allocation8 + $0x5c0] ss:$16 sps:$4 sm:$0xff]   ;;  %v4500_v51 = vld [vmem:[#allocation8 + $0x1ac] ss:$16 sps:$4 sm:$0xff]  }
  0x6d   :  { %1325 = vmatprep.subr.bf16.mxu1 %v4413_v53  ;;  %v4495_v53 = vld [vmem:[#allocation8 + $0x5a0] ss:$16 sps:$4 sm:$0xff]  }
  0x6f   :  { %1285 = vmatpush2.bf16.msra.mxu0 %v4415_v54  ;;  %v4498_v54 = vld [vmem:[#allocation8 + $0x1a8] ss:$16 sps:$4 sm:$0xff]  }
  0x70   :  { %1326 = vmatpush2.bf16.msra.mxu1 %v4416_v55  ;;  %1286 = vmatprep.subr.bf16.mxu0 %v4417_v56  ;;  %v4503_v55 = vld [vmem:[#allocation8 + $0x584] ss:$16 sps:$4 sm:$0xff]   ;;  %v4506_v56 = vld [vmem:[#allocation8 + $0x18c] ss:$16 sps:$4 sm:$0xff]  }
  0x71   :  { %1327 = vmatprep.subr.bf16.mxu1 %v4419_v57  ;;  %v4501_v57 = vld [vmem:[#allocation8 + $0x580] ss:$16 sps:$4 sm:$0xff]  }
  0x73   :  { %1287 = vmatpush2.bf16.msra.mxu0 %v4421_v58  ;;  %v4504_v58 = vld [vmem:[#allocation8 + $0x188] ss:$16 sps:$4 sm:$0xff]  }
  0x74   :  { %1328 = vmatpush2.bf16.msra.mxu1 %v4422_v59  ;;  %1288 = vmatprep.subr.bf16.mxu0 %v4423_v60  ;;  %v4509_v59 = vld [vmem:[#allocation8 + $0x564] ss:$16 sps:$4 sm:$0xff]   ;;  %v4512_v60 = vld [vmem:[#allocation8 + $0x16c] ss:$16 sps:$4 sm:$0xff]  }
  0x75   :  { %1329 = vmatprep.subr.bf16.mxu1 %v4425_v61  ;;  %v4507_v61 = vld [vmem:[#allocation8 + $0x560] ss:$16 sps:$4 sm:$0xff]  }
  0x77   :  { %1289 = vmatpush2.bf16.msra.mxu0 %v4427_v62  ;;  %v4510_v62 = vld [vmem:[#allocation8 + $0x168] ss:$16 sps:$4 sm:$0xff]  }
  0x78   :  { %1330 = vmatpush2.bf16.msra.mxu1 %v4428_v63  ;;  %1290 = vmatprep.subr.bf16.mxu0 %v4429_v0  ;;  %v4515_v63 = vld [vmem:[#allocation8 + $0x544] ss:$16 sps:$4 sm:$0xff]   ;;  %v4518_v0 = vld [vmem:[#allocation8 + $0x14c] ss:$16 sps:$4 sm:$0xff]  }
  0x79   :  { %1331 = vmatprep.subr.bf16.mxu1 %v4431_v1  ;;  %v4513_v1 = vld [vmem:[#allocation8 + $0x540] ss:$16 sps:$4 sm:$0xff]  }
  0x7b   :  { %1291 = vmatpush2.bf16.msra.mxu0 %v4433_v2  ;;  %v4516_v2 = vld [vmem:[#allocation8 + $0x148] ss:$16 sps:$4 sm:$0xff]  }
  0x7c   :  { %1332 = vmatpush2.bf16.msra.mxu1 %v4434_v3  ;;  %1342 = vmatprep.subr.bf16.mxu0 %v4437_v6  ;;  %v4521_v3 = vld [vmem:[#allocation8 + $0x524] ss:$16 sps:$4 sm:$0xff]   ;;  %v4522_v6 = vld [vmem:[#allocation8 + $0x128] ss:$16 sps:$4 sm:$0xff]  }
  0x7d   :  { %1383 = vmatprep.subr.bf16.mxu1 %v4440_v7  ;;  %v4527_v7 = vld [vmem:[#allocation8 + $0x504] ss:$16 sps:$4 sm:$0xff]  }
  0x7e   :  { %1293 = vmatmul.mubr.bf16.vlgmr.msra.gmra.mxu0 %v5242_v8 }
  0x7f   :  { %1334 = vmatmul.mubr.bf16.vlgmr.msra.gmra.mxu1 %v5244_v9  ;;  %1343 = vmatpush1.bf16.msra.mxu0 %v4435_v10  ;;  %v4530_v10 = vld [vmem:[#allocation8 + $0x10c] ss:$16 sps:$4 sm:$0xff]  }
  0x80   :  { %1384 = vmatpush1.bf16.msra.mxu1 %v4438_v11  ;;  %1344 = vmatprep.subr.bf16.mxu0 %v4443_v12  ;;  %v4525_v11 = vld [vmem:[#allocation8 + $0x500] ss:$16 sps:$4 sm:$0xff]   ;;  %v4528_v12 = vld [vmem:[#allocation8 + $0x108] ss:$16 sps:$4 sm:$0xff]  }
  0x81   :  { %1385 = vmatprep.subr.bf16.mxu1 %v4446_v13  ;;  %1415 = vmatprep.mubr.bf16.mxu1 %v5236_v49  ;;  %v4492_v49 = vld [vmem:[#allocation8 + $0x1c8] ss:$16 sps:$4 sm:$0xff]   ;;  %v100_v13 = vld [vmem:[#allocation3 + $0x20] sm:$0xff] }
  0x82   :  { %1374 = vmatprep.mubr.bf16.mxu0 %v5249_v35 }
  0x83   :  { %1345 = vmatpush1.bf16.msra.mxu0 %v4441_v14  ;;  %v4533_v14 = vld [vmem:[#allocation8 + $0x2ec] ss:$16 sps:$4 sm:$0xff]  }
  0x84   :  { %1386 = vmatpush1.bf16.msra.mxu1 %v4444_v15  ;;  %1346 = vmatprep.subr.bf16.mxu0 %v4449_v16  ;;  %v4536_v15 = vld [vmem:[#allocation8 + $0x4ec] ss:$16 sps:$4 sm:$0xff]   ;;  %v5252_v16 = vpack.c.bf16 %v100_v13, %v100_v13 }
  0x85   :  { %1387 = vmatprep.subr.bf16.mxu1 %v4452_v17  ;;  %v4531_v17 = vld [vmem:[#allocation8 + $0x2e8] ss:$16 sps:$4 sm:$0xff]   ;;  %v4626_v13 = vld [vmem:[#allocation8 + $0x50c] ss:$16 sps:$4 sm:$0xff]  }
  0x87   :  { %1347 = vmatpush1.bf16.msra.mxu0 %v4447_v18  ;;  %v4534_v18 = vld [vmem:[#allocation8 + $0x4e8] ss:$16 sps:$4 sm:$0xff]  }
  0x88   :  { %1388 = vmatpush1.bf16.msra.mxu1 %v4450_v19  ;;  %1348 = vmatprep.subr.bf16.mxu0 %v4455_v20  ;;  %v4539_v19 = vld [vmem:[#allocation8 + $0x2cc] ss:$16 sps:$4 sm:$0xff]  }
  0x89   :  { %1389 = vmatprep.subr.bf16.mxu1 %v4458_v21  ;;  %v4542_v20 = vld [vmem:[#allocation8 + $0x4cc] ss:$16 sps:$4 sm:$0xff]   ;;  %v4537_v21 = vld [vmem:[#allocation8 + $0x2c8] ss:$16 sps:$4 sm:$0xff]  }
  0x8b   :  { %1349 = vmatpush1.bf16.msra.mxu0 %v4453_v22  ;;  %v4540_v22 = vld [vmem:[#allocation8 + $0x4c8] ss:$16 sps:$4 sm:$0xff]  }
  0x8c   :  { %1390 = vmatpush1.bf16.msra.mxu1 %v4456_v23  ;;  %1350 = vmatprep.subr.bf16.mxu0 %v4461_v24  ;;  %v4545_v23 = vld [vmem:[#allocation8 + $0x2ac] ss:$16 sps:$4 sm:$0xff]  }
  0x8d   :  { %1391 = vmatprep.subr.bf16.mxu1 %v4464_v25  ;;  %v4548_v24 = vld [vmem:[#allocation8 + $0x4ac] ss:$16 sps:$4 sm:$0xff]   ;;  %v4543_v25 = vld [vmem:[#allocation8 + $0x2a8] ss:$16 sps:$4 sm:$0xff]  }
  0x8f   :  { %1351 = vmatpush1.bf16.msra.mxu0 %v4459_v26  ;;  %v4546_v26 = vld [vmem:[#allocation8 + $0x4a8] ss:$16 sps:$4 sm:$0xff]  }
  0x90   :  { %1392 = vmatpush1.bf16.msra.mxu1 %v4462_v27  ;;  %1352 = vmatprep.subr.bf16.mxu0 %v4467_v28  ;;  %v4551_v27 = vld [vmem:[#allocation8 + $0x28c] ss:$16 sps:$4 sm:$0xff]   ;;  %v4549_v28 = vld [vmem:[#allocation8 + $0x288] ss:$16 sps:$4 sm:$0xff]  }
  0x91   :  { %1393 = vmatprep.subr.bf16.mxu1 %v4470_v29  ;;  %v4552_v29 = vld [vmem:[#allocation8 + $0x488] ss:$16 sps:$4 sm:$0xff]  }
  0x93   :  { %1353 = vmatpush1.bf16.msra.mxu0 %v4465_v30  ;;  %v4557_v30 = vld [vmem:[#allocation8 + $0x26c] ss:$16 sps:$4 sm:$0xff]  }
  0x94   :  { %1394 = vmatpush1.bf16.msra.mxu1 %v4468_v31  ;;  %1354 = vmatprep.subr.bf16.mxu0 %v4473_v32  ;;  %v4560_v31 = vld [vmem:[#allocation8 + $0x46c] ss:$16 sps:$4 sm:$0xff]   ;;  %v4558_v32 = vld [vmem:[#allocation8 + $0x468] ss:$16 sps:$4 sm:$0xff]  }
  0x95   :  { %1395 = vmatprep.subr.bf16.mxu1 %v4476_v33  ;;  %v4563_v33 = vld [vmem:[#allocation8 + $0x24c] ss:$16 sps:$4 sm:$0xff]  }
  0x97   :  { %1355 = vmatpush1.bf16.msra.mxu0 %v4471_v36  ;;  %v4564_v36 = vld [vmem:[#allocation8 + $0x448] ss:$16 sps:$4 sm:$0xff]  }
  0x98   :  { %1396 = vmatpush1.bf16.msra.mxu1 %v4474_v37  ;;  %1356 = vmatprep.subr.bf16.mxu0 %v4479_v38  ;;  %v4569_v37 = vld [vmem:[#allocation8 + $0x22c] ss:$16 sps:$4 sm:$0xff]  }
  0x99   :  { %1397 = vmatprep.subr.bf16.mxu1 %v4482_v39  ;;  %v4572_v38 = vld [vmem:[#allocation8 + $0x42c] ss:$16 sps:$4 sm:$0xff]   ;;  %v4567_v39 = vld [vmem:[#allocation8 + $0x228] ss:$16 sps:$4 sm:$0xff]  }
  0x9b   :  { %1357 = vmatpush1.bf16.msra.mxu0 %v4477_v40  ;;  %v4570_v40 = vld [vmem:[#allocation8 + $0x428] ss:$16 sps:$4 sm:$0xff]  }
  0x9c   :  { %1398 = vmatpush1.bf16.msra.mxu1 %v4480_v41  ;;  %1358 = vmatprep.subr.bf16.mxu0 %v4485_v42  ;;  %v4575_v41 = vld [vmem:[#allocation8 + $0x20c] ss:$16 sps:$4 sm:$0xff]  }
  0x9d   :  { %1399 = vmatprep.subr.bf16.mxu1 %v4488_v43  ;;  %v4578_v42 = vld [vmem:[#allocation8 + $0x40c] ss:$16 sps:$4 sm:$0xff]   ;;  %v4573_v43 = vld [vmem:[#allocation8 + $0x208] ss:$16 sps:$4 sm:$0xff]  }
  0x9f   :  { %1359 = vmatpush2.bf16.msra.mxu0 %v4483_v44  ;;  %v4576_v44 = vld [vmem:[#allocation8 + $0x408] ss:$16 sps:$4 sm:$0xff]  }
  0xa0   :  { %1400 = vmatpush2.bf16.msra.mxu1 %v4486_v45  ;;  %1360 = vmatprep.subr.bf16.mxu0 %v4491_v46  ;;  %v4581_v45 = vld [vmem:[#allocation8 + $0x3ec] ss:$16 sps:$4 sm:$0xff]  }
  0xa1   :  { %1401 = vmatprep.subr.bf16.mxu1 %v4494_v47  ;;  %v4584_v46 = vld [vmem:[#allocation8 + $0x5ec] ss:$16 sps:$4 sm:$0xff]   ;;  %v4579_v47 = vld [vmem:[#allocation8 + $0x3e8] ss:$16 sps:$4 sm:$0xff]  }
  0xa3   :  { %1361 = vmatpush2.bf16.msra.mxu0 %v4489_v48  ;;  %v4582_v48 = vld [vmem:[#allocation8 + $0x5e8] ss:$16 sps:$4 sm:$0xff]  }
  0xa4   :  { %1402 = vmatpush2.bf16.msra.mxu1 %v4492_v49  ;;  %1362 = vmatprep.subr.bf16.mxu0 %v4497_v50  ;;  %v4587_v49 = vld [vmem:[#allocation8 + $0x3cc] ss:$16 sps:$4 sm:$0xff]  }
  0xa5   :  { %1403 = vmatprep.subr.bf16.mxu1 %v4500_v51  ;;  %v4590_v50 = vld [vmem:[#allocation8 + $0x5cc] ss:$16 sps:$4 sm:$0xff]   ;;  %v4585_v51 = vld [vmem:[#allocation8 + $0x3c8] ss:$16 sps:$4 sm:$0xff]  }
  0xa7   :  { %1363 = vmatpush2.bf16.msra.mxu0 %v4495_v53  ;;  %v4588_v53 = vld [vmem:[#allocation8 + $0x5c8] ss:$16 sps:$4 sm:$0xff]  }
  0xa8   :  { %1404 = vmatpush2.bf16.msra.mxu1 %v4498_v54  ;;  %1364 = vmatprep.subr.bf16.mxu0 %v4503_v55  ;;  %v4593_v54 = vld [vmem:[#allocation8 + $0x3ac] ss:$16 sps:$4 sm:$0xff]  }
  0xa9   :  { %1405 = vmatprep.subr.bf16.mxu1 %v4506_v56  ;;  %v4596_v55 = vld [vmem:[#allocation8 + $0x5ac] ss:$16 sps:$4 sm:$0xff]   ;;  %v4591_v56 = vld [vmem:[#allocation8 + $0x3a8] ss:$16 sps:$4 sm:$0xff]  }
  0xab   :  { %1365 = vmatpush2.bf16.msra.mxu0 %v4501_v57  ;;  %v4594_v57 = vld [vmem:[#allocation8 + $0x5a8] ss:$16 sps:$4 sm:$0xff]  }
  0xac   :  { %1406 = vmatpush2.bf16.msra.mxu1 %v4504_v58  ;;  %1366 = vmatprep.subr.bf16.mxu0 %v4509_v59  ;;  %v4599_v58 = vld [vmem:[#allocation8 + $0x38c] ss:$16 sps:$4 sm:$0xff]  }
  0xad   :  { %1407 = vmatprep.subr.bf16.mxu1 %v4512_v60  ;;  %v4602_v59 = vld [vmem:[#allocation8 + $0x58c] ss:$16 sps:$4 sm:$0xff]   ;;  %v4597_v60 = vld [vmem:[#allocation8 + $0x388] ss:$16 sps:$4 sm:$0xff]  }
  0xaf   :  { %1367 = vmatpush2.bf16.msra.mxu0 %v4507_v61  ;;  %v4600_v61 = vld [vmem:[#allocation8 + $0x588] ss:$16 sps:$4 sm:$0xff]  }
  0xb0   :  { %1408 = vmatpush2.bf16.msra.mxu1 %v4510_v62  ;;  %1368 = vmatprep.subr.bf16.mxu0 %v4515_v63  ;;  %v4605_v62 = vld [vmem:[#allocation8 + $0x36c] ss:$16 sps:$4 sm:$0xff]  }
  0xb1   :  { %1409 = vmatprep.subr.bf16.mxu1 %v4518_v0  ;;  %v4608_v63 = vld [vmem:[#allocation8 + $0x56c] ss:$16 sps:$4 sm:$0xff]   ;;  %v4603_v0 = vld [vmem:[#allocation8 + $0x368] ss:$16 sps:$4 sm:$0xff]  }
  0xb3   :  { %1369 = vmatpush2.bf16.msra.mxu0 %v4513_v1  ;;  %v4606_v1 = vld [vmem:[#allocation8 + $0x568] ss:$16 sps:$4 sm:$0xff]  }
  0xb4   :  { %1410 = vmatpush2.bf16.msra.mxu1 %v4516_v2  ;;  %1370 = vmatprep.subr.bf16.mxu0 %v4521_v3  ;;  %v4611_v2 = vld [vmem:[#allocation8 + $0x34c] ss:$16 sps:$4 sm:$0xff]  }
  0xb5   :  { %1411 = vmatprep.subr.bf16.mxu1 %v4524_v4  ;;  %v4614_v3 = vld [vmem:[#allocation8 + $0x54c] ss:$16 sps:$4 sm:$0xff]   ;;  %v4609_v4 = vld [vmem:[#allocation8 + $0x348] ss:$16 sps:$4 sm:$0xff]  }
  0xb7   :  { %1371 = vmatpush2.bf16.msra.mxu0 %v4519_v5  ;;  %v4612_v5 = vld [vmem:[#allocation8 + $0x548] ss:$16 sps:$4 sm:$0xff]  }
  0xb8   :  { %1412 = vmatpush2.bf16.msra.mxu1 %v4522_v6  ;;  %1372 = vmatprep.subr.bf16.mxu0 %v4527_v7  ;;  %v4617_v6 = vld [vmem:[#allocation8 + $0x32c] ss:$16 sps:$4 sm:$0xff]  }
  0xb9   :  { %1413 = vmatprep.subr.bf16.mxu1 %v4530_v10  ;;  %v4620_v7 = vld [vmem:[#allocation8 + $0x52c] ss:$16 sps:$4 sm:$0xff]   ;;  %v4615_v10 = vld [vmem:[#allocation8 + $0x328] ss:$16 sps:$4 sm:$0xff]  }
  0xbb   :  { %1373 = vmatpush2.bf16.msra.mxu0 %v4525_v11  ;;  %v4618_v11 = vld [vmem:[#allocation8 + $0x528] ss:$16 sps:$4 sm:$0xff]  }
  0xbc   :  { %1414 = vmatpush2.bf16.msra.mxu1 %v4528_v12  ;;  %1424 = vmatprep.subr.bf16.mxu0 %v4533_v14  ;;  %v4623_v12 = vld [vmem:[#allocation8 + $0x30c] ss:$16 sps:$4 sm:$0xff]   ;;  %v4621_v14 = vld [vmem:[#allocation8 + $0x308] ss:$16 sps:$4 sm:$0xff]  }
  0xbd   :  { %1465 = vmatprep.subr.bf16.mxu1 %v4536_v15  ;;  %v4624_v15 = vld [vmem:[#allocation8 + $0x508] ss:$16 sps:$4 sm:$0xff]  }
  0xbe   :  { %1375 = vmatmul.mubr.bf16.vlgmr.msra.gmra.mxu0 %v5252_v16 }
  0xbf   :  { %1416 = vmatmul.mubr.bf16.vlgmr.msra.gmra.mxu1 %v5242_v8  ;;  %1425 = vmatpush1.bf16.msra.mxu0 %v4531_v17  ;;  %v4554_v8 = vld [vmem:[#allocation8 + $0x48c] ss:$16 sps:$4 sm:$0xff]   ;;  %v4629_v17 = vld [vmem:[#allocation9 + $0xe4] ss:$16 sps:$4 sm:$0xff]  }
  0xc0   :  { %1466 = vmatpush1.bf16.msra.mxu1 %v4534_v18  ;;  %1426 = vmatprep.subr.bf16.mxu0 %v4539_v19  ;;  %v4632_v18 = vld [vmem:[#allocation9 + $0x2e4] ss:$16 sps:$4 sm:$0xff]   ;;  %v1515_v19 = vld [vmem:[#allocation6 + $0x8] sm:$0xff] }
  0xc1   :  { %1467 = vmatprep.subr.bf16.mxu1 %v4542_v20  ;;  %1456 = vmatprep.mubr.bf16.mxu0 %v5238_v52  ;;  %v4555_v52 = vld [vmem:[#allocation8 + $0x268] ss:$16 sps:$4 sm:$0xff]  }
  0xc2   :  { %1497 = vmatprep.mubr.bf16.mxu1 %v5249_v35  ;;  %v4561_v35 = vld [vmem:[#allocation8 + $0x248] ss:$16 sps:$4 sm:$0xff]  }
  0xc3   :  { %1427 = vmatpush1.bf16.msra.mxu0 %v4537_v21  ;;  %v1517_v20 = vld [vmem:[#allocation6 + $0x18] sm:$0xff]  ;;  %v4627_v21 = vld [vmem:[#allocation9 + $0xe0] ss:$16 sps:$4 sm:$0xff]  }
  0xc4   :  { %1468 = vmatpush1.bf16.msra.mxu1 %v4540_v22  ;;  %1428 = vmatprep.subr.bf16.mxu0 %v4545_v23  ;;  %v4630_v22 = vld [vmem:[#allocation9 + $0x2e0] ss:$16 sps:$4 sm:$0xff]   ;;  %v4635_v23 = vld [vmem:[#allocation9 + $0xc4] ss:$16 sps:$4 sm:$0xff]  }
  0xc5   :  { %1469 = vmatprep.subr.bf16.mxu1 %v4548_v24  ;;  %v4638_v24 = vld [vmem:[#allocation9 + $0x2c4] ss:$16 sps:$4 sm:$0xff]  }
  0xc7   :  { %1429 = vmatpush1.bf16.msra.mxu0 %v4543_v25  ;;  %v5258_v25 = vpack.c.bf16 %v1515_v19, %v1515_v19  ;;  %v4717_v19 = vld [vmem:[#allocation9 + $0x100] ss:$16 sps:$4 sm:$0xff]  }
  0xc8   :  { %1470 = vmatpush1.bf16.msra.mxu1 %v4546_v26  ;;  %1430 = vmatprep.subr.bf16.mxu0 %v4551_v27  ;;  %v5260_v26 = vpack.c.bf16 %v1517_v20, %v1517_v20  ;;  %v4633_v27 = vld [vmem:[#allocation9 + $0xc0] ss:$16 sps:$4 sm:$0xff]  }
  0xc9   :  { %1471 = vmatprep.subr.bf16.mxu1 %v4554_v8  ;;  %v4636_v8 = vld [vmem:[#allocation9 + $0x2c0] ss:$16 sps:$4 sm:$0xff]  }
  0xca   :  { %v4720_v20 = vld [vmem:[#allocation9 + $0x300] ss:$16 sps:$4 sm:$0xff]  }
  0xcb   :  { %1431 = vmatpush1.bf16.msra.mxu0 %v4549_v28  ;;  %v4641_v28 = vld [vmem:[#allocation9 + $0xa4] ss:$16 sps:$4 sm:$0xff]  }
  0xcc   :  { %1472 = vmatpush1.bf16.msra.mxu1 %v4552_v29  ;;  %1432 = vmatprep.subr.bf16.mxu0 %v4557_v30  ;;  %v4644_v29 = vld [vmem:[#allocation9 + $0x2a4] ss:$16 sps:$4 sm:$0xff]   ;;  %v4639_v30 = vld [vmem:[#allocation9 + $0xa0] ss:$16 sps:$4 sm:$0xff]  }
  0xcd   :  { %1473 = vmatprep.subr.bf16.mxu1 %v4560_v31  ;;  %v4642_v31 = vld [vmem:[#allocation9 + $0x2a0] ss:$16 sps:$4 sm:$0xff]  }
  0xcf   :  { %1433 = vmatpush1.bf16.msra.mxu0 %v4555_v52  ;;  %v4645_v52 = vld [vmem:[#allocation9 + $0x80] ss:$16 sps:$4 sm:$0xff]  }
  0xd0   :  { %1474 = vmatpush1.bf16.msra.mxu1 %v4558_v32  ;;  %1434 = vmatprep.subr.bf16.mxu0 %v4563_v33  ;;  %v4648_v32 = vld [vmem:[#allocation9 + $0x280] ss:$16 sps:$4 sm:$0xff]   ;;  %v4653_v33 = vld [vmem:[#allocation9 + $0x64] ss:$16 sps:$4 sm:$0xff]  }
  0xd1   :  { %1475 = vmatprep.subr.bf16.mxu1 %v4566_v34  ;;  %v4656_v34 = vld [vmem:[#allocation9 + $0x264] ss:$16 sps:$4 sm:$0xff]  }
  0xd3   :  { %1435 = vmatpush1.bf16.msra.mxu0 %v4561_v35  ;;  %v4651_v35 = vld [vmem:[#allocation9 + $0x60] ss:$16 sps:$4 sm:$0xff]  }
  0xd4   :  { %1476 = vmatpush1.bf16.msra.mxu1 %v4564_v36  ;;  %1436 = vmatprep.subr.bf16.mxu0 %v4569_v37  ;;  %v4654_v36 = vld [vmem:[#allocation9 + $0x260] ss:$16 sps:$4 sm:$0xff]   ;;  %v4659_v37 = vld [vmem:[#allocation9 + $0x44] ss:$16 sps:$4 sm:$0xff]  }
  0xd5   :  { %1477 = vmatprep.subr.bf16.mxu1 %v4572_v38  ;;  %v4662_v38 = vld [vmem:[#allocation9 + $0x244] ss:$16 sps:$4 sm:$0xff]  }
  0xd7   :  { %1437 = vmatpush1.bf16.msra.mxu0 %v4567_v39  ;;  %v4657_v39 = vld [vmem:[#allocation9 + $0x40] ss:$16 sps:$4 sm:$0xff]  }
  0xd8   :  { %1478 = vmatpush1.bf16.msra.mxu1 %v4570_v40  ;;  %1438 = vmatprep.subr.bf16.mxu0 %v4575_v41  ;;  %v4660_v40 = vld [vmem:[#allocation9 + $0x240] ss:$16 sps:$4 sm:$0xff]   ;;  %v4665_v41 = vld [vmem:[#allocation9 + $0x24] ss:$16 sps:$4 sm:$0xff]  }
  0xd9   :  { %1479 = vmatprep.subr.bf16.mxu1 %v4578_v42  ;;  %v4668_v42 = vld [vmem:[#allocation9 + $0x224] ss:$16 sps:$4 sm:$0xff]  }
  0xdb   :  { %1439 = vmatpush1.bf16.msra.mxu0 %v4573_v43  ;;  %v4663_v43 = vld [vmem:[#allocation9 + $0x20] ss:$16 sps:$4 sm:$0xff]  }
  0xdc   :  { %1480 = vmatpush1.bf16.msra.mxu1 %v4576_v44  ;;  %1440 = vmatprep.subr.bf16.mxu0 %v4581_v45  ;;  %v4666_v44 = vld [vmem:[#allocation9 + $0x220] ss:$16 sps:$4 sm:$0xff]   ;;  %v4671_v45 = vld [vmem:[#allocation9 + $0x4] ss:$16 sps:$4 sm:$0xff]  }
  0xdd   :  { %1481 = vmatprep.subr.bf16.mxu1 %v4584_v46  ;;  %v4674_v46 = vld [vmem:[#allocation9 + $0x204] ss:$16 sps:$4 sm:$0xff]  }
  0xdf   :  { %1441 = vmatpush2.bf16.msra.mxu0 %v4579_v47  ;;  %v4669_v47 = vld [vmem:[#allocation9] ss:$16 sps:$4 sm:$0xff]  }
  0xe0   :  { %1482 = vmatpush2.bf16.msra.mxu1 %v4582_v48  ;;  %1442 = vmatprep.subr.bf16.mxu0 %v4587_v49  ;;  %v4672_v48 = vld [vmem:[#allocation9 + $0x200] ss:$16 sps:$4 sm:$0xff]   ;;  %v4677_v49 = vld [vmem:[#allocation9 + $0x1e4] ss:$16 sps:$4 sm:$0xff]  }
  0xe1   :  { %1483 = vmatprep.subr.bf16.mxu1 %v4590_v50  ;;  %v4680_v50 = vld [vmem:[#allocation9 + $0x3e4] ss:$16 sps:$4 sm:$0xff]  }
  0xe3   :  { %1443 = vmatpush2.bf16.msra.mxu0 %v4585_v51  ;;  %v4675_v51 = vld [vmem:[#allocation9 + $0x1e0] ss:$16 sps:$4 sm:$0xff]  }
  0xe4   :  { %1484 = vmatpush2.bf16.msra.mxu1 %v4588_v53  ;;  %1444 = vmatprep.subr.bf16.mxu0 %v4593_v54  ;;  %v4678_v53 = vld [vmem:[#allocation9 + $0x3e0] ss:$16 sps:$4 sm:$0xff]   ;;  %v4683_v54 = vld [vmem:[#allocation9 + $0x1c4] ss:$16 sps:$4 sm:$0xff]  }
  0xe5   :  { %1485 = vmatprep.subr.bf16.mxu1 %v4596_v55  ;;  %v4686_v55 = vld [vmem:[#allocation9 + $0x3c4] ss:$16 sps:$4 sm:$0xff]  }
  0xe7   :  { %1445 = vmatpush2.bf16.msra.mxu0 %v4591_v56  ;;  %v4681_v56 = vld [vmem:[#allocation9 + $0x1c0] ss:$16 sps:$4 sm:$0xff]  }
  0xe8   :  { %1486 = vmatpush2.bf16.msra.mxu1 %v4594_v57  ;;  %1446 = vmatprep.subr.bf16.mxu0 %v4599_v58  ;;  %v4684_v57 = vld [vmem:[#allocation9 + $0x3c0] ss:$16 sps:$4 sm:$0xff]   ;;  %v4689_v58 = vld [vmem:[#allocation9 + $0x1a4] ss:$16 sps:$4 sm:$0xff]  }
  0xe9   :  { %1487 = vmatprep.subr.bf16.mxu1 %v4602_v59  ;;  %v4692_v59 = vld [vmem:[#allocation9 + $0x3a4] ss:$16 sps:$4 sm:$0xff]  }
  0xeb   :  { %1447 = vmatpush2.bf16.msra.mxu0 %v4597_v60  ;;  %v4687_v60 = vld [vmem:[#allocation9 + $0x1a0] ss:$16 sps:$4 sm:$0xff]  }
  0xec   :  { %1488 = vmatpush2.bf16.msra.mxu1 %v4600_v61  ;;  %1448 = vmatprep.subr.bf16.mxu0 %v4605_v62  ;;  %v4690_v61 = vld [vmem:[#allocation9 + $0x3a0] ss:$16 sps:$4 sm:$0xff]   ;;  %v4695_v62 = vld [vmem:[#allocation9 + $0x184] ss:$16 sps:$4 sm:$0xff]  }
  0xed   :  { %1489 = vmatprep.subr.bf16.mxu1 %v4608_v63  ;;  %v4698_v63 = vld [vmem:[#allocation9 + $0x384] ss:$16 sps:$4 sm:$0xff]  }
  0xef   :  { %1449 = vmatpush2.bf16.msra.mxu0 %v4603_v0  ;;  %v4693_v0 = vld [vmem:[#allocation9 + $0x180] ss:$16 sps:$4 sm:$0xff]  }
  0xf0   :  { %1490 = vmatpush2.bf16.msra.mxu1 %v4606_v1  ;;  %1450 = vmatprep.subr.bf16.mxu0 %v4611_v2  ;;  %v4696_v1 = vld [vmem:[#allocation9 + $0x380] ss:$16 sps:$4 sm:$0xff]   ;;  %v4701_v2 = vld [vmem:[#allocation9 + $0x164] ss:$16 sps:$4 sm:$0xff]  }
  0xf1   :  { %1491 = vmatprep.subr.bf16.mxu1 %v4614_v3  ;;  %v4704_v3 = vld [vmem:[#allocation9 + $0x364] ss:$16 sps:$4 sm:$0xff]  }
  0xf3   :  { %1451 = vmatpush2.bf16.msra.mxu0 %v4609_v4  ;;  %v4699_v4 = vld [vmem:[#allocation9 + $0x160] ss:$16 sps:$4 sm:$0xff]  }
  0xf4   :  { %1492 = vmatpush2.bf16.msra.mxu1 %v4612_v5  ;;  %1452 = vmatprep.subr.bf16.mxu0 %v4617_v6  ;;  %v4702_v5 = vld [vmem:[#allocation9 + $0x360] ss:$16 sps:$4 sm:$0xff]   ;;  %v4707_v6 = vld [vmem:[#allocation9 + $0x144] ss:$16 sps:$4 sm:$0xff]  }
  0xf5   :  { %1493 = vmatprep.subr.bf16.mxu1 %v4620_v7  ;;  %v4710_v7 = vld [vmem:[#allocation9 + $0x344] ss:$16 sps:$4 sm:$0xff]  }
  0xf7   :  { %1453 = vmatpush2.bf16.msra.mxu0 %v4615_v10  ;;  %v4705_v10 = vld [vmem:[#allocation9 + $0x140] ss:$16 sps:$4 sm:$0xff]  }
  0xf8   :  { %1494 = vmatpush2.bf16.msra.mxu1 %v4618_v11  ;;  %1454 = vmatprep.subr.bf16.mxu0 %v4623_v12  ;;  %v4708_v11 = vld [vmem:[#allocation9 + $0x340] ss:$16 sps:$4 sm:$0xff]   ;;  %v4713_v12 = vld [vmem:[#allocation9 + $0x124] ss:$16 sps:$4 sm:$0xff]  }
  0xf9   :  { %1495 = vmatprep.subr.bf16.mxu1 %v4626_v13  ;;  %v4716_v13 = vld [vmem:[#allocation9 + $0x324] ss:$16 sps:$4 sm:$0xff]  }
  0xfb   :  { %1455 = vmatpush2.bf16.msra.mxu0 %v4621_v14  ;;  %v4711_v14 = vld [vmem:[#allocation9 + $0x120] ss:$16 sps:$4 sm:$0xff]  }
  0xfc   :  { %1496 = vmatpush2.bf16.msra.mxu1 %v4624_v15  ;;  %3066 = vmatprep.subr.bf16.mxu0 %v4629_v17  ;;  %v4714_v15 = vld [vmem:[#allocation9 + $0x320] ss:$16 sps:$4 sm:$0xff]   ;;  %v4719_v17 = vld [vmem:[#allocation9 + $0x104] ss:$16 sps:$4 sm:$0xff]  }
  0xfd   :  { %3107 = vmatprep.subr.bf16.mxu1 %v4632_v18  ;;  %v4722_v18 = vld [vmem:[#allocation9 + $0x304] ss:$16 sps:$4 sm:$0xff]  }
  0xfe   :  { %1457 = vmatmul.mubr.bf16.vlgmr.msra.gmra.mxu0 %v5244_v9  ;;  %v4647_v9 = vld [vmem:[#allocation9 + $0x84] ss:$16 sps:$4 sm:$0xff]  }
  0xff   :  { %1498 = vmatmul.mubr.bf16.vlgmr.msra.gmra.mxu1 %v5252_v16  ;;  %3067 = vmatpush1.bf16.msra.mxu0 %v4627_v21  ;;  %v4650_v16 = vld [vmem:[#allocation9 + $0x284] ss:$16 sps:$4 sm:$0xff]  }
 0x100   :  { %3108 = vmatpush1.bf16.msra.mxu1 %v4630_v22  ;;  %3068 = vmatprep.subr.bf16.mxu0 %v4635_v23  ;;  %v1514_v21 = vld [vmem:[#allocation6] sm:$0xff]  ;;  %v1516_v22 = vld [vmem:[#allocation6 + $0x10] sm:$0xff] }
 0x101   :  { %3109 = vmatprep.subr.bf16.mxu1 %v4638_v24  ;;  %3098 = vmatprep.mubr.bf16.mxu0 %v5258_v25  ;;  %v4725_v23 = vld [vmem:[#allocation9 + $0x4e4] ss:$16 sps:$4 sm:$0xff]  }
 0x102   :  { %3139 = vmatprep.mubr.bf16.mxu1 %v5260_v26  ;;  %v4728_v24 = vld [vmem:[#allocation9 + $0x6e4] ss:$16 sps:$4 sm:$0xff]  }
 0x103   :  { %3069 = vmatpush1.bf16.msra.mxu0 %v4633_v27  ;;  %v1519_v27 = vld [vmem:[#allocation6 + $0x28] sm:$0xff] }
 0x104   :  { %3110 = vmatpush1.bf16.msra.mxu1 %v4636_v8  ;;  %3070 = vmatprep.subr.bf16.mxu0 %v4641_v28  ;;  %v5266_v8 = vpack.c.bf16 %v1514_v21, %v1514_v21  ;;  %v5268_v28 = vpack.c.bf16 %v1516_v22, %v1516_v22  ;;  %v4791_v21 = vld [vmem:[#allocation9 + $0x584] ss:$16 sps:$4 sm:$0xff]  }
 0x105   :  { %3111 = vmatprep.subr.bf16.mxu1 %v4644_v29  ;;  %v1521_v29 = vld [vmem:[#allocation6 + $0x38] sm:$0xff]  ;;  %v4794_v22 = vld [vmem:[#allocation9 + $0x784] ss:$16 sps:$4 sm:$0xff]  }
 0x107   :  { %3071 = vmatpush1.bf16.msra.mxu0 %v4639_v30  ;;  %v4723_v30 = vld [vmem:[#allocation9 + $0x4e0] ss:$16 sps:$4 sm:$0xff]  }
 0x108   :  { %3112 = vmatpush1.bf16.msra.mxu1 %v4642_v31  ;;  %3072 = vmatprep.subr.bf16.mxu0 %v4647_v9  ;;  %v4726_v31 = vld [vmem:[#allocation9 + $0x6e0] ss:$16 sps:$4 sm:$0xff]   ;;  %v4731_v9 = vld [vmem:[#allocation9 + $0x4c4] ss:$16 sps:$4 sm:$0xff]  }
 0x109   :  { %3113 = vmatprep.subr.bf16.mxu1 %v4650_v16  ;;  %v4734_v16 = vld [vmem:[#allocation9 + $0x6c4] ss:$16 sps:$4 sm:$0xff]  }
 0x10b   :  { %3073 = vmatpush1.bf16.msra.mxu0 %v4645_v52  ;;  %v5270_v52 = vpack.c.bf16 %v1519_v27, %v1519_v27  ;;  %v4797_v27 = vld [vmem:[#allocation9 + $0x564] ss:$16 sps:$4 sm:$0xff]  }
 0x10c   :  { %3114 = vmatpush1.bf16.msra.mxu1 %v4648_v32  ;;  %3074 = vmatprep.subr.bf16.mxu0 %v4653_v33  ;;  %v5272_v32 = vpack.c.bf16 %v1521_v29, %v1521_v29  ;;  %v4800_v29 = vld [vmem:[#allocation9 + $0x764] ss:$16 sps:$4 sm:$0xff]  }
 0x10d   :  { %3115 = vmatprep.subr.bf16.mxu1 %v4656_v34 }
 0x10f   :  { %3075 = vmatpush1.bf16.msra.mxu0 %v4651_v35 }
 0x110   :  { %3116 = vmatpush1.bf16.msra.mxu1 %v4654_v36  ;;  %3076 = vmatprep.subr.bf16.mxu0 %v4659_v37  ;;  %v4729_v36 = vld [vmem:[#allocation9 + $0x4c0] ss:$16 sps:$4 sm:$0xff]  }
 0x111   :  { %3117 = vmatprep.subr.bf16.mxu1 %v4662_v38  ;;  %v4732_v37 = vld [vmem:[#allocation9 + $0x6c0] ss:$16 sps:$4 sm:$0xff]  }
 0x113   :  { %3077 = vmatpush1.bf16.msra.mxu0 %v4657_v39 }
 0x114   :  { %3118 = vmatpush1.bf16.msra.mxu1 %v4660_v40  ;;  %3078 = vmatprep.subr.bf16.mxu0 %v4665_v41  ;;  %v4737_v40 = vld [vmem:[#allocation9 + $0x4a4] ss:$16 sps:$4 sm:$0xff]  }
 0x115   :  { %3119 = vmatprep.subr.bf16.mxu1 %v4668_v42  ;;  %v4740_v41 = vld [vmem:[#allocation9 + $0x6a4] ss:$16 sps:$4 sm:$0xff]  }
 0x117   :  { %3079 = vmatpush1.bf16.msra.mxu0 %v4663_v43 }
 0x118   :  { %3120 = vmatpush1.bf16.msra.mxu1 %v4666_v44  ;;  %3080 = vmatprep.subr.bf16.mxu0 %v4671_v45  ;;  %v4735_v45 = vld [vmem:[#allocation9 + $0x4a0] ss:$16 sps:$4 sm:$0xff]  }
 0x119   :  { %3121 = vmatprep.subr.bf16.mxu1 %v4674_v46  ;;  %v4738_v46 = vld [vmem:[#allocation9 + $0x6a0] ss:$16 sps:$4 sm:$0xff]  }
 0x11b   :  { %3081 = vmatpush1.bf16.msra.mxu0 %v4669_v47 }
 0x11c   :  { %3122 = vmatpush1.bf16.msra.mxu1 %v4672_v48  ;;  %3082 = vmatprep.subr.bf16.mxu0 %v4677_v49  ;;  %v4743_v49 = vld [vmem:[#allocation9 + $0x484] ss:$16 sps:$4 sm:$0xff]  }
 0x11d   :  { %3123 = vmatprep.subr.bf16.mxu1 %v4680_v50  ;;  %v4746_v50 = vld [vmem:[#allocation9 + $0x684] ss:$16 sps:$4 sm:$0xff]  }
 0x11f   :  { %3083 = vmatpush2.bf16.msra.mxu0 %v4675_v51  ;;  %v4741_v51 = vld [vmem:[#allocation9 + $0x480] ss:$16 sps:$4 sm:$0xff]  }
 0x120   :  { %3124 = vmatpush2.bf16.msra.mxu1 %v4678_v53  ;;  %3084 = vmatprep.subr.bf16.mxu0 %v4683_v54  ;;  %v4744_v53 = vld [vmem:[#allocation9 + $0x680] ss:$16 sps:$4 sm:$0xff]   ;;  %v4749_v54 = vld [vmem:[#allocation9 + $0x464] ss:$16 sps:$4 sm:$0xff]  }
 0x121   :  { %3125 = vmatprep.subr.bf16.mxu1 %v4686_v55  ;;  %v4752_v55 = vld [vmem:[#allocation9 + $0x664] ss:$16 sps:$4 sm:$0xff]  }
 0x123   :  { %3085 = vmatpush2.bf16.msra.mxu0 %v4681_v56  ;;  %v4747_v56 = vld [vmem:[#allocation9 + $0x460] ss:$16 sps:$4 sm:$0xff]  }
 0x124   :  { %3126 = vmatpush2.bf16.msra.mxu1 %v4684_v57  ;;  %3086 = vmatprep.subr.bf16.mxu0 %v4689_v58  ;;  %v4750_v57 = vld [vmem:[#allocation9 + $0x660] ss:$16 sps:$4 sm:$0xff]   ;;  %v4755_v58 = vld [vmem:[#allocation9 + $0x444] ss:$16 sps:$4 sm:$0xff]  }
 0x125   :  { %3127 = vmatprep.subr.bf16.mxu1 %v4692_v59  ;;  %v4758_v59 = vld [vmem:[#allocation9 + $0x644] ss:$16 sps:$4 sm:$0xff]  }
 0x127   :  { %3087 = vmatpush2.bf16.msra.mxu0 %v4687_v60  ;;  %v4753_v60 = vld [vmem:[#allocation9 + $0x440] ss:$16 sps:$4 sm:$0xff]  }
 0x128   :  { %3128 = vmatpush2.bf16.msra.mxu1 %v4690_v61  ;;  %3088 = vmatprep.subr.bf16.mxu0 %v4695_v62  ;;  %v4756_v61 = vld [vmem:[#allocation9 + $0x640] ss:$16 sps:$4 sm:$0xff]   ;;  %v4761_v62 = vld [vmem:[#allocation9 + $0x424] ss:$16 sps:$4 sm:$0xff]  }
 0x129   :  { %3129 = vmatprep.subr.bf16.mxu1 %v4698_v63  ;;  %v4764_v63 = vld [vmem:[#allocation9 + $0x624] ss:$16 sps:$4 sm:$0xff]  }
 0x12b   :  { %3089 = vmatpush2.bf16.msra.mxu0 %v4693_v0  ;;  %v4759_v0 = vld [vmem:[#allocation9 + $0x420] ss:$16 sps:$4 sm:$0xff]  }
 0x12c   :  { %3130 = vmatpush2.bf16.msra.mxu1 %v4696_v1  ;;  %3090 = vmatprep.subr.bf16.mxu0 %v4701_v2  ;;  %v4762_v1 = vld [vmem:[#allocation9 + $0x620] ss:$16 sps:$4 sm:$0xff]   ;;  %v4767_v2 = vld [vmem:[#allocation9 + $0x404] ss:$16 sps:$4 sm:$0xff]  }
 0x12d   :  { %3131 = vmatprep.subr.bf16.mxu1 %v4704_v3  ;;  %v4770_v3 = vld [vmem:[#allocation9 + $0x604] ss:$16 sps:$4 sm:$0xff]  }
 0x12f   :  { %3091 = vmatpush2.bf16.msra.mxu0 %v4699_v4  ;;  %v4765_v4 = vld [vmem:[#allocation9 + $0x400] ss:$16 sps:$4 sm:$0xff]  }
 0x130   :  { %3132 = vmatpush2.bf16.msra.mxu1 %v4702_v5  ;;  %3092 = vmatprep.subr.bf16.mxu0 %v4707_v6  ;;  %v4768_v5 = vld [vmem:[#allocation9 + $0x600] ss:$16 sps:$4 sm:$0xff]   ;;  %v4773_v6 = vld [vmem:[#allocation9 + $0x5e4] ss:$16 sps:$4 sm:$0xff]  }
 0x131   :  { %3133 = vmatprep.subr.bf16.mxu1 %v4710_v7  ;;  %v4776_v7 = vld [vmem:[#allocation9 + $0x7e4] ss:$16 sps:$4 sm:$0xff]  }
 0x133   :  { %3093 = vmatpush2.bf16.msra.mxu0 %v4705_v10  ;;  %v4771_v10 = vld [vmem:[#allocation9 + $0x5e0] ss:$16 sps:$4 sm:$0xff]  }
 0x134   :  { %3134 = vmatpush2.bf16.msra.mxu1 %v4708_v11  ;;  %3094 = vmatprep.subr.bf16.mxu0 %v4713_v12  ;;  %v4774_v11 = vld [vmem:[#allocation9 + $0x7e0] ss:$16 sps:$4 sm:$0xff]   ;;  %v4779_v12 = vld [vmem:[#allocation9 + $0x5c4] ss:$16 sps:$4 sm:$0xff]  }
 0x135   :  { %3135 = vmatprep.subr.bf16.mxu1 %v4716_v13  ;;  %v4782_v13 = vld [vmem:[#allocation9 + $0x7c4] ss:$16 sps:$4 sm:$0xff]  }
 0x137   :  { %3095 = vmatpush2.bf16.msra.mxu0 %v4711_v14  ;;  %v4777_v14 = vld [vmem:[#allocation9 + $0x5c0] ss:$16 sps:$4 sm:$0xff]  }
 0x138   :  { %3136 = vmatpush2.bf16.msra.mxu1 %v4714_v15  ;;  %3096 = vmatprep.subr.bf16.mxu0 %v4719_v17  ;;  %v4780_v15 = vld [vmem:[#allocation9 + $0x7c0] ss:$16 sps:$4 sm:$0xff]   ;;  %v4785_v17 = vld [vmem:[#allocation9 + $0x5a4] ss:$16 sps:$4 sm:$0xff]  }
 0x139   :  { %3137 = vmatprep.subr.bf16.mxu1 %v4722_v18  ;;  %v4788_v18 = vld [vmem:[#allocation9 + $0x7a4] ss:$16 sps:$4 sm:$0xff]  }
 0x13b   :  { %3097 = vmatpush2.bf16.msra.mxu0 %v4717_v19  ;;  %v4783_v19 = vld [vmem:[#allocation9 + $0x5a0] ss:$16 sps:$4 sm:$0xff]  }
 0x13c   :  { %3138 = vmatpush2.bf16.msra.mxu1 %v4720_v20  ;;  %3148 = vmatprep.subr.bf16.mxu0 %v4725_v23  ;;  %v4786_v20 = vld [vmem:[#allocation9 + $0x7a0] ss:$16 sps:$4 sm:$0xff]  }
 0x13d   :  { %3189 = vmatprep.subr.bf16.mxu1 %v4728_v24  ;;  %v4789_v23 = vld [vmem:[#allocation9 + $0x580] ss:$16 sps:$4 sm:$0xff]  }
 0x13e   :  { %v1294_v33 = vpop.f32.mrf.mxu0  ;;  %3099 = vmatmul.mubr.bf16.vlgmr.msra.gmra.mxu0 %v5266_v8  ;;  %v4792_v24 = vld [vmem:[#allocation9 + $0x780] ss:$16 sps:$4 sm:$0xff]  }
 0x13f   :  { %v1335_v34 = vpop.f32.mrf.mxu1  ;;  %3140 = vmatmul.mubr.bf16.vlgmr.msra.gmra.mxu1 %v5268_v28  ;;  %3149 = vmatpush1.bf16.msra.mxu0 %v4723_v30  ;;  %v4795_v30 = vld [vmem:[#allocation9 + $0x560] ss:$16 sps:$4 sm:$0xff]  }
 0x140   :  { %v5276_v35 = vadd.f32 %v1335_v34, %v1294_v33  ;;  %3190 = vmatpush1.bf16.msra.mxu1 %v4726_v31  ;;  %v1296_v38 = vpop.f32.mrf.mxu0  ;;  %3150 = vmatprep.subr.bf16.mxu0 %v4731_v9  ;;  %v4798_v31 = vld [vmem:[#allocation9 + $0x760] ss:$16 sps:$4 sm:$0xff]   ;;  %v4803_v9 = vld [vmem:[#allocation9 + $0x544] ss:$16 sps:$4 sm:$0xff]  }
 0x141   :  { %v1337_v39 = vpop.f32.mrf.mxu1  ;;  %3191 = vmatprep.subr.bf16.mxu1 %v4734_v16  ;;  %3180 = vmatprep.mubr.bf16.mxu0 %v5270_v52  ;;  %v4806_v16 = vld [vmem:[#allocation9 + $0x744] ss:$16 sps:$4 sm:$0xff]   ;;  %v4801_v33 = vld [vmem:[#allocation9 + $0x540] ss:$16 sps:$4 sm:$0xff]  }
 0x142   :  { %v5278_v42 = vadd.f32 %v1337_v39, %v1296_v38  ;;  %3221 = vmatprep.mubr.bf16.mxu1 %v5272_v32  ;;  %v1298_v43 = vpop.f32.mrf.mxu0  ;;  %v4804_v34 = vld [vmem:[#allocation9 + $0x740] ss:$16 sps:$4 sm:$0xff]  }
 0x143   :  { %v1339_v44 = vpop.f32.mrf.mxu1  ;;  %3151 = vmatpush1.bf16.msra.mxu0 %v4729_v36  ;;  %v4809_v36 = vld [vmem:[#allocation9 + $0x524] ss:$16 sps:$4 sm:$0xff]   ;;  %v4807_v38 = vld [vmem:[#allocation9 + $0x520] ss:$16 sps:$4 sm:$0xff]  }
 0x144   :  { %3192 = vmatpush1.bf16.msra.mxu1 %v4732_v37  ;;  %v1299_v47 = vpop.f32.mrf.mxu0  ;;  %3152 = vmatprep.subr.bf16.mxu0 %v4737_v40  ;;  %v4812_v37 = vld [vmem:[#allocation9 + $0x724] ss:$16 sps:$4 sm:$0xff]   ;;  %v4810_v39 = vld [vmem:[#allocation9 + $0x720] ss:$16 sps:$4 sm:$0xff]  }
 0x145   :  { %v1340_v48 = vpop.f32.mrf.mxu1  ;;  %3193 = vmatprep.subr.bf16.mxu1 %v4740_v41  ;;  %v4815_v40 = vld [vmem:[#allocation9 + $0x504] ss:$16 sps:$4 sm:$0xff]   ;;  %v4813_v43 = vld [vmem:[#allocation9 + $0x500] ss:$16 sps:$4 sm:$0xff]   ;;  %v4821_v47 = vld [vmem:[#allocation9 + $0xec] ss:$16 sps:$4 sm:$0xff]  }
 0x146   :  { %v4818_v41 = vld [vmem:[#allocation9 + $0x704] ss:$16 sps:$4 sm:$0xff]   ;;  %v4816_v44 = vld [vmem:[#allocation9 + $0x700] ss:$16 sps:$4 sm:$0xff]   ;;  %v4824_v48 = vld [vmem:[#allocation9 + $0x2ec] ss:$16 sps:$4 sm:$0xff]  }
 0x147   :  { %3153 = vmatpush1.bf16.msra.mxu0 %v4735_v45  ;;  %v1518_v45 = vld [vmem:[#allocation6 + $0x20] sm:$0xff] }
 0x148   :  { %3194 = vmatpush1.bf16.msra.mxu1 %v4738_v46  ;;  %3154 = vmatprep.subr.bf16.mxu0 %v4743_v49  ;;  %v1520_v46 = vld [vmem:[#allocation6 + $0x30] sm:$0xff]  ;;  %v4819_v49 = vld [vmem:[#allocation9 + $0xe8] ss:$16 sps:$4 sm:$0xff]  }
 0x149   :  { %3195 = vmatprep.subr.bf16.mxu1 %v4746_v50  ;;  %v4822_v50 = vld [vmem:[#allocation9 + $0x2e8] ss:$16 sps:$4 sm:$0xff]  }
 0x14b   :  { %3155 = vmatpush1.bf16.msra.mxu0 %v4741_v51  ;;  %v5282_v51 = vpack.c.bf16 %v1518_v45, %v1518_v45  ;;  %v4885_v45 = vld [vmem:[#allocation9 + $0x188] ss:$16 sps:$4 sm:$0xff]  }
 0x14c   :  { %3196 = vmatpush1.bf16.msra.mxu1 %v4744_v53  ;;  %3156 = vmatprep.subr.bf16.mxu0 %v4749_v54  ;;  %v5284_v53 = vpack.c.bf16 %v1520_v46, %v1520_v46  ;;  %v4827_v54 = vld [vmem:[#allocation9 + $0xcc] ss:$16 sps:$4 sm:$0xff]   ;;  %v4888_v46 = vld [vmem:[#allocation9 + $0x388] ss:$16 sps:$4 sm:$0xff]  }
 0x14d   :  { %3197 = vmatprep.subr.bf16.mxu1 %v4752_v55  ;;  %v4830_v55 = vld [vmem:[#allocation9 + $0x2cc] ss:$16 sps:$4 sm:$0xff]  }
 0x14f   :  { %3157 = vmatpush1.bf16.msra.mxu0 %v4747_v56  ;;  %v4825_v56 = vld [vmem:[#allocation9 + $0xc8] ss:$16 sps:$4 sm:$0xff]  }
 0x150   :  { %3198 = vmatpush1.bf16.msra.mxu1 %v4750_v57  ;;  %3158 = vmatprep.subr.bf16.mxu0 %v4755_v58 }
 0x151   :  { %3199 = vmatprep.subr.bf16.mxu1 %v4758_v59 }
 0x153   :  { %3159 = vmatpush1.bf16.msra.mxu0 %v4753_v60  ;;  %v4828_v60 = vld [vmem:[#allocation9 + $0x2c8] ss:$16 sps:$4 sm:$0xff]  }
 0x154   :  { %3200 = vmatpush1.bf16.msra.mxu1 %v4756_v61  ;;  %3160 = vmatprep.subr.bf16.mxu0 %v4761_v62 }
 0x155   :  { %3201 = vmatprep.subr.bf16.mxu1 %v4764_v63  ;;  %v4833_v63 = vld [vmem:[#allocation9 + $0xac] ss:$16 sps:$4 sm:$0xff]  }
 0x157   :  { %3161 = vmatpush1.bf16.msra.mxu0 %v4759_v0  ;;  %v4836_v0 = vld [vmem:[#allocation9 + $0x2ac] ss:$16 sps:$4 sm:$0xff]  }
 0x158   :  { %3202 = vmatpush1.bf16.msra.mxu1 %v4762_v1  ;;  %3162 = vmatprep.subr.bf16.mxu0 %v4767_v2 }
 0x159   :  { %3203 = vmatprep.subr.bf16.mxu1 %v4770_v3  ;;  %v4831_v3 = vld [vmem:[#allocation9 + $0xa8] ss:$16 sps:$4 sm:$0xff]  }
 0x15b   :  { %3163 = vmatpush1.bf16.msra.mxu0 %v4765_v4  ;;  %v4834_v4 = vld [vmem:[#allocation9 + $0x2a8] ss:$16 sps:$4 sm:$0xff]  }
 0x15c   :  { %3204 = vmatpush1.bf16.msra.mxu1 %v4768_v5  ;;  %3164 = vmatprep.subr.bf16.mxu0 %v4773_v6 }
 0x15d   :  { %3205 = vmatprep.subr.bf16.mxu1 %v4776_v7  ;;  %v4839_v7 = vld [vmem:[#allocation9 + $0x8c] ss:$16 sps:$4 sm:$0xff]  }
 0x15f   :  { %3165 = vmatpush2.bf16.msra.mxu0 %v4771_v10  ;;  %v4842_v10 = vld [vmem:[#allocation9 + $0x28c] ss:$16 sps:$4 sm:$0xff]  }
 0x160   :  { %3206 = vmatpush2.bf16.msra.mxu1 %v4774_v11  ;;  %3166 = vmatprep.subr.bf16.mxu0 %v4779_v12  ;;  %v4840_v11 = vld [vmem:[#allocation9 + $0x288] ss:$16 sps:$4 sm:$0xff]  }
 0x161   :  { %3207 = vmatprep.subr.bf16.mxu1 %v4782_v13  ;;  %v4843_v12 = vld [vmem:[#allocation9 + $0x68] ss:$16 sps:$4 sm:$0xff]  }
 0x162   :  { %v4846_v13 = vld [vmem:[#allocation9 + $0x268] ss:$16 sps:$4 sm:$0xff]  }
 0x163   :  { %3167 = vmatpush2.bf16.msra.mxu0 %v4777_v14  ;;  %v4851_v14 = vld [vmem:[#allocation9 + $0x4c] ss:$16 sps:$4 sm:$0xff]  }
 0x164   :  { %3208 = vmatpush2.bf16.msra.mxu1 %v4780_v15  ;;  %3168 = vmatprep.subr.bf16.mxu0 %v4785_v17  ;;  %v4854_v15 = vld [vmem:[#allocation9 + $0x24c] ss:$16 sps:$4 sm:$0xff]   ;;  %v4849_v17 = vld [vmem:[#allocation9 + $0x48] ss:$16 sps:$4 sm:$0xff]  }
 0x165   :  { %3209 = vmatprep.subr.bf16.mxu1 %v4788_v18  ;;  %v4852_v18 = vld [vmem:[#allocation9 + $0x248] ss:$16 sps:$4 sm:$0xff]  }
 0x167   :  { %3169 = vmatpush2.bf16.msra.mxu0 %v4783_v19  ;;  %v4857_v19 = vld [vmem:[#allocation9 + $0x2c] ss:$16 sps:$4 sm:$0xff]  }
 0x168   :  { %3210 = vmatpush2.bf16.msra.mxu1 %v4786_v20  ;;  %3170 = vmatprep.subr.bf16.mxu0 %v4791_v21  ;;  %v4860_v20 = vld [vmem:[#allocation9 + $0x22c] ss:$16 sps:$4 sm:$0xff]   ;;  %v4855_v21 = vld [vmem:[#allocation9 + $0x28] ss:$16 sps:$4 sm:$0xff]  }
 0x169   :  { %3211 = vmatprep.subr.bf16.mxu1 %v4794_v22  ;;  %v4858_v22 = vld [vmem:[#allocation9 + $0x228] ss:$16 sps:$4 sm:$0xff]  }
 0x16b   :  { %3171 = vmatpush2.bf16.msra.mxu0 %v4789_v23  ;;  %v4863_v23 = vld [vmem:[#allocation9 + $0xc] ss:$16 sps:$4 sm:$0xff]  }
 0x16c   :  { %3212 = vmatpush2.bf16.msra.mxu1 %v4792_v24  ;;  %3172 = vmatprep.subr.bf16.mxu0 %v4797_v27  ;;  %v4866_v24 = vld [vmem:[#allocation9 + $0x20c] ss:$16 sps:$4 sm:$0xff]   ;;  %v4861_v27 = vld [vmem:[#allocation9 + $0x8] ss:$16 sps:$4 sm:$0xff]  }
 0x16d   :  { %3213 = vmatprep.subr.bf16.mxu1 %v4800_v29  ;;  %v4864_v29 = vld [vmem:[#allocation9 + $0x208] ss:$16 sps:$4 sm:$0xff]  }
 0x16f   :  { %3173 = vmatpush2.bf16.msra.mxu0 %v4795_v30  ;;  %v4869_v30 = vld [vmem:[#allocation9 + $0x1ec] ss:$16 sps:$4 sm:$0xff]  }
 0x170   :  { %3214 = vmatpush2.bf16.msra.mxu1 %v4798_v31  ;;  %3174 = vmatprep.subr.bf16.mxu0 %v4803_v9  ;;  %v4872_v31 = vld [vmem:[#allocation9 + $0x3ec] ss:$16 sps:$4 sm:$0xff]   ;;  %v4867_v9 = vld [vmem:[#allocation9 + $0x1e8] ss:$16 sps:$4 sm:$0xff]  }
 0x171   :  { %3215 = vmatprep.subr.bf16.mxu1 %v4806_v16  ;;  %v4870_v16 = vld [vmem:[#allocation9 + $0x3e8] ss:$16 sps:$4 sm:$0xff]  }
 0x173   :  { %3175 = vmatpush2.bf16.msra.mxu0 %v4801_v33  ;;  %v4875_v33 = vld [vmem:[#allocation9 + $0x1cc] ss:$16 sps:$4 sm:$0xff]  }
 0x174   :  { %3216 = vmatpush2.bf16.msra.mxu1 %v4804_v34  ;;  %3176 = vmatprep.subr.bf16.mxu0 %v4809_v36  ;;  %v4878_v34 = vld [vmem:[#allocation9 + $0x3cc] ss:$16 sps:$4 sm:$0xff]   ;;  %v4873_v36 = vld [vmem:[#allocation9 + $0x1c8] ss:$16 sps:$4 sm:$0xff]  }
 0x175   :  { %3217 = vmatprep.subr.bf16.mxu1 %v4812_v37  ;;  %v4876_v37 = vld [vmem:[#allocation9 + $0x3c8] ss:$16 sps:$4 sm:$0xff]  }
 0x177   :  { %3177 = vmatpush2.bf16.msra.mxu0 %v4807_v38  ;;  %v4881_v38 = vld [vmem:[#allocation9 + $0x1ac] ss:$16 sps:$4 sm:$0xff]  }
 0x178   :  { %3218 = vmatpush2.bf16.msra.mxu1 %v4810_v39  ;;  %3178 = vmatprep.subr.bf16.mxu0 %v4815_v40  ;;  %v4884_v39 = vld [vmem:[#allocation9 + $0x3ac] ss:$16 sps:$4 sm:$0xff]   ;;  %v4879_v40 = vld [vmem:[#allocation9 + $0x1a8] ss:$16 sps:$4 sm:$0xff]  }
 0x179   :  { %3219 = vmatprep.subr.bf16.mxu1 %v4818_v41  ;;  %v4882_v41 = vld [vmem:[#allocation9 + $0x3a8] ss:$16 sps:$4 sm:$0xff]  }
 0x17b   :  { %3179 = vmatpush2.bf16.msra.mxu0 %v4813_v43  ;;  %v4887_v43 = vld [vmem:[#allocation9 + $0x18c] ss:$16 sps:$4 sm:$0xff]  }
 0x17c   :  { %3220 = vmatpush2.bf16.msra.mxu1 %v4816_v44  ;;  %3230 = vmatprep.subr.bf16.mxu0 %v4821_v47  ;;  %v4890_v44 = vld [vmem:[#allocation9 + $0x38c] ss:$16 sps:$4 sm:$0xff]  }
 0x17d   :  { %3271 = vmatprep.subr.bf16.mxu1 %v4824_v48  ;;  %v4893_v47 = vld [vmem:[#allocation9 + $0x16c] ss:$16 sps:$4 sm:$0xff]  }
 0x17e   :  { %v1376_v57 = vpop.f32.mrf.mxu0  ;;  %3181 = vmatmul.mubr.bf16.vlgmr.msra.gmra.mxu0 %v5282_v51  ;;  %v4896_v48 = vld [vmem:[#allocation9 + $0x36c] ss:$16 sps:$4 sm:$0xff]  }
 0x17f   :  { %v5286_v58 = vpop.f32.mrf.mxu1  ;;  %3222 = vmatmul.mubr.bf16.vlgmr.msra.gmra.mxu1 %v5284_v53  ;;  %v5291_v59 = vadd.f32 %v1376_v57, %v5276_v35  ;;  %3231 = vmatpush1.bf16.msra.mxu0 %v4819_v49  ;;  %v4891_v49 = vld [vmem:[#allocation9 + $0x168] ss:$16 sps:$4 sm:$0xff]  }
 0x180   :  { %3272 = vmatpush1.bf16.msra.mxu1 %v4822_v50  ;;  %v1378_v61 = vpop.f32.mrf.mxu0  ;;  %3232 = vmatprep.subr.bf16.mxu0 %v4827_v54  ;;  %v4894_v50 = vld [vmem:[#allocation9 + $0x368] ss:$16 sps:$4 sm:$0xff]   ;;  %v4899_v54 = vld [vmem:[#allocation9 + $0x14c] ss:$16 sps:$4 sm:$0xff]  }
 0x181   :  { %v5293_v62 = vpop.f32.mrf.mxu1  ;;  %3273 = vmatprep.subr.bf16.mxu1 %v4830_v55  ;;  %v5296_v1 = vadd.f32 %v1378_v61, %v5278_v42  ;;  %3262 = vmatprep.mubr.bf16.mxu0 %v5258_v25  ;;  %v4837_v42 = vld [vmem:[#allocation9 + $0x88] ss:$16 sps:$4 sm:$0xff]   ;;  %v4845_v25 = vld [vmem:[#allocation9 + $0x6c] ss:$16 sps:$4 sm:$0xff]  }
 0x182   :  { %3303 = vmatprep.mubr.bf16.mxu1 %v5260_v26  ;;  %v1380_v2 = vpop.f32.mrf.mxu0  ;;  %v4848_v26 = vld [vmem:[#allocation9 + $0x26c] ss:$16 sps:$4 sm:$0xff]   ;;  %v4900_v57 = vld [vmem:[#allocation9 + $0x348] ss:$16 sps:$4 sm:$0xff]  }
 0x183   :  { %v1421_v35 = vpop.f32.mrf.mxu1  ;;  %3233 = vmatpush1.bf16.msra.mxu0 %v4825_v56  ;;  %v4902_v55 = vld [vmem:[#allocation9 + $0x34c] ss:$16 sps:$4 sm:$0xff]   ;;  %v4897_v56 = vld [vmem:[#allocation9 + $0x148] ss:$16 sps:$4 sm:$0xff]  }
 0x184   :  { %3274 = vmatpush1.bf16.msra.mxu1 %v4828_v60  ;;  %v1381_v5 = vpop.f32.mrf.mxu0  ;;  %3234 = vmatprep.subr.bf16.mxu0 %v4833_v63  ;;  %v4905_v60 = vld [vmem:[#allocation9 + $0x12c] ss:$16 sps:$4 sm:$0xff]   ;;  %v4903_v63 = vld [vmem:[#allocation9 + $0x128] ss:$16 sps:$4 sm:$0xff]  }
 0x185   :  { %v1422_v6 = vpop.f32.mrf.mxu1  ;;  %3275 = vmatprep.subr.bf16.mxu1 %v4836_v0  ;;  %v4908_v61 = vld [vmem:[#allocation9 + $0x32c] ss:$16 sps:$4 sm:$0xff]   ;;  %v4906_v0 = vld [vmem:[#allocation9 + $0x328] ss:$16 sps:$4 sm:$0xff]  }
 0x186   :  { %v4911_v2 = vld [vmem:[#allocation9 + $0x10c] ss:$16 sps:$4 sm:$0xff]  }
 0x187   :  { %3235 = vmatpush1.bf16.msra.mxu0 %v4831_v3  ;;  %v4914_v35 = vld [vmem:[#allocation9 + $0x30c] ss:$16 sps:$4 sm:$0xff]   ;;  %v4909_v3 = vld [vmem:[#allocation9 + $0x108] ss:$16 sps:$4 sm:$0xff]  }
 0x188   :  { %3276 = vmatpush1.bf16.msra.mxu1 %v4834_v4  ;;  %3236 = vmatprep.subr.bf16.mxu0 %v4839_v7  ;;  %v4912_v4 = vld [vmem:[#allocation9 + $0x308] ss:$16 sps:$4 sm:$0xff]   ;;  %v4917_v5 = vld [vmem:[#allocation9 + $0x4ec] ss:$16 sps:$4 sm:$0xff]  }
 0x189   :  { %3277 = vmatprep.subr.bf16.mxu1 %v4842_v10  ;;  %v4920_v6 = vld [vmem:[#allocation9 + $0x6ec] ss:$16 sps:$4 sm:$0xff]   ;;  %v4915_v7 = vld [vmem:[#allocation9 + $0x4e8] ss:$16 sps:$4 sm:$0xff]  }
 0x18a   :  { %v4918_v10 = vld [vmem:[#allocation9 + $0x6e8] ss:$16 sps:$4 sm:$0xff]  }
 0x18b   :  { %3237 = vmatpush1.bf16.msra.mxu0 %v4837_v42  ;;  %v4923_v42 = vld [vmem:[#allocation9 + $0x4cc] ss:$16 sps:$4 sm:$0xff]  }
 0x18c   :  { %3278 = vmatpush1.bf16.msra.mxu1 %v4840_v11  ;;  %3238 = vmatprep.subr.bf16.mxu0 %v4845_v25  ;;  %v4926_v11 = vld [vmem:[#allocation9 + $0x6cc] ss:$16 sps:$4 sm:$0xff]  }
 0x18d   :  { %3279 = vmatprep.subr.bf16.mxu1 %v4848_v26 }
 0x18f   :  { %3239 = vmatpush1.bf16.msra.mxu0 %v4843_v12 }
 0x190   :  { %3280 = vmatpush1.bf16.msra.mxu1 %v4846_v13  ;;  %3240 = vmatprep.subr.bf16.mxu0 %v4851_v14  ;;  %v4921_v13 = vld [vmem:[#allocation9 + $0x4c8] ss:$16 sps:$4 sm:$0xff]  }
 0x191   :  { %3281 = vmatprep.subr.bf16.mxu1 %v4854_v15  ;;  %v4924_v14 = vld [vmem:[#allocation9 + $0x6c8] ss:$16 sps:$4 sm:$0xff]  }
 0x193   :  { %3241 = vmatpush1.bf16.msra.mxu0 %v4849_v17 }
 0x194   :  { %3282 = vmatpush1.bf16.msra.mxu1 %v4852_v18  ;;  %3242 = vmatprep.subr.bf16.mxu0 %v4857_v19  ;;  %v4929_v18 = vld [vmem:[#allocation9 + $0x4ac] ss:$16 sps:$4 sm:$0xff]  }
 0x195   :  { %3283 = vmatprep.subr.bf16.mxu1 %v4860_v20  ;;  %v4932_v19 = vld [vmem:[#allocation9 + $0x6ac] ss:$16 sps:$4 sm:$0xff]  }
 0x197   :  { %3243 = vmatpush1.bf16.msra.mxu0 %v4855_v21 }
 0x198   :  { %3284 = vmatpush1.bf16.msra.mxu1 %v4858_v22  ;;  %3244 = vmatprep.subr.bf16.mxu0 %v4863_v23  ;;  %v4927_v22 = vld [vmem:[#allocation9 + $0x4a8] ss:$16 sps:$4 sm:$0xff]  }
 0x199   :  { %3285 = vmatprep.subr.bf16.mxu1 %v4866_v24  ;;  %v4930_v23 = vld [vmem:[#allocation9 + $0x6a8] ss:$16 sps:$4 sm:$0xff]  }
 0x19b   :  { %3245 = vmatpush1.bf16.msra.mxu0 %v4861_v27 }
 0x19c   :  { %3286 = vmatpush1.bf16.msra.mxu1 %v4864_v29  ;;  %3246 = vmatprep.subr.bf16.mxu0 %v4869_v30  ;;  %v4935_v29 = vld [vmem:[#allocation9 + $0x48c] ss:$16 sps:$4 sm:$0xff]  }
 0x19d   :  { %3287 = vmatprep.subr.bf16.mxu1 %v4872_v31  ;;  %v4938_v30 = vld [vmem:[#allocation9 + $0x68c] ss:$16 sps:$4 sm:$0xff]  }
 0x19e   :  { %v4944_v31 = vld [vmem:[#allocation9 + $0x66c] ss:$16 sps:$4 sm:$0xff]  }
 0x19f   :  { %3247 = vmatpush2.bf16.msra.mxu0 %v4867_v9  ;;  %v4939_v9 = vld [vmem:[#allocation9 + $0x468] ss:$16 sps:$4 sm:$0xff]  }
 0x1a0   :  { %3288 = vmatpush2.bf16.msra.mxu1 %v4870_v16  ;;  %3248 = vmatprep.subr.bf16.mxu0 %v4875_v33  ;;  %v4942_v16 = vld [vmem:[#allocation9 + $0x668] ss:$16 sps:$4 sm:$0xff]   ;;  %v4947_v33 = vld [vmem:[#allocation9 + $0x44c] ss:$16 sps:$4 sm:$0xff]  }
 0x1a1   :  { %3289 = vmatprep.subr.bf16.mxu1 %v4878_v34  ;;  %v4950_v34 = vld [vmem:[#allocation9 + $0x64c] ss:$16 sps:$4 sm:$0xff]  }
 0x1a3   :  { %3249 = vmatpush2.bf16.msra.mxu0 %v4873_v36  ;;  %v4945_v36 = vld [vmem:[#allocation9 + $0x448] ss:$16 sps:$4 sm:$0xff]  }
 0x1a4   :  { %3290 = vmatpush2.bf16.msra.mxu1 %v4876_v37  ;;  %3250 = vmatprep.subr.bf16.mxu0 %v4881_v38  ;;  %v4948_v37 = vld [vmem:[#allocation9 + $0x648] ss:$16 sps:$4 sm:$0xff]   ;;  %v4953_v38 = vld [vmem:[#allocation9 + $0x42c] ss:$16 sps:$4 sm:$0xff]  }
 0x1a5   :  { %3291 = vmatprep.subr.bf16.mxu1 %v4884_v39  ;;  %v4956_v39 = vld [vmem:[#allocation9 + $0x62c] ss:$16 sps:$4 sm:$0xff]  }
 0x1a7   :  { %3251 = vmatpush2.bf16.msra.mxu0 %v4879_v40  ;;  %v4951_v40 = vld [vmem:[#allocation9 + $0x428] ss:$16 sps:$4 sm:$0xff]  }
 0x1a8   :  { %3292 = vmatpush2.bf16.msra.mxu1 %v4882_v41  ;;  %3252 = vmatprep.subr.bf16.mxu0 %v4887_v43  ;;  %v4954_v41 = vld [vmem:[#allocation9 + $0x628] ss:$16 sps:$4 sm:$0xff]   ;;  %v4959_v43 = vld [vmem:[#allocation9 + $0x40c] ss:$16 sps:$4 sm:$0xff]  }
 0x1a9   :  { %3293 = vmatprep.subr.bf16.mxu1 %v4890_v44  ;;  %v4962_v44 = vld [vmem:[#allocation9 + $0x60c] ss:$16 sps:$4 sm:$0xff]  }
 0x1ab   :  { %3253 = vmatpush2.bf16.msra.mxu0 %v4885_v45  ;;  %v4957_v45 = vld [vmem:[#allocation9 + $0x408] ss:$16 sps:$4 sm:$0xff]  }
 0x1ac   :  { %3294 = vmatpush2.bf16.msra.mxu1 %v4888_v46  ;;  %3254 = vmatprep.subr.bf16.mxu0 %v4893_v47  ;;  %v4960_v46 = vld [vmem:[#allocation9 + $0x608] ss:$16 sps:$4 sm:$0xff]   ;;  %v4965_v47 = vld [vmem:[#allocation9 + $0x5ec] ss:$16 sps:$4 sm:$0xff]  }
 0x1ad   :  { %3295 = vmatprep.subr.bf16.mxu1 %v4896_v48  ;;  %v4968_v48 = vld [vmem:[#allocation9 + $0x7ec] ss:$16 sps:$4 sm:$0xff]  }
 0x1af   :  { %3255 = vmatpush2.bf16.msra.mxu0 %v4891_v49  ;;  %v4963_v49 = vld [vmem:[#allocation9 + $0x5e8] ss:$16 sps:$4 sm:$0xff]  }
 0x1b0   :  { %3296 = vmatpush2.bf16.msra.mxu1 %v4894_v50  ;;  %3256 = vmatprep.subr.bf16.mxu0 %v4899_v54  ;;  %v4966_v50 = vld [vmem:[#allocation9 + $0x7e8] ss:$16 sps:$4 sm:$0xff]   ;;  %v4971_v54 = vld [vmem:[#allocation9 + $0x5cc] ss:$16 sps:$4 sm:$0xff]  }
 0x1b1   :  { %3297 = vmatprep.subr.bf16.mxu1 %v4902_v55  ;;  %v4974_v55 = vld [vmem:[#allocation9 + $0x7cc] ss:$16 sps:$4 sm:$0xff]  }
 0x1b3   :  { %3257 = vmatpush2.bf16.msra.mxu0 %v4897_v56  ;;  %v4969_v56 = vld [vmem:[#allocation9 + $0x5c8] ss:$16 sps:$4 sm:$0xff]  }
 0x1b4   :  { %3298 = vmatpush2.bf16.msra.mxu1 %v4900_v57  ;;  %3258 = vmatprep.subr.bf16.mxu0 %v4905_v60  ;;  %v4972_v57 = vld [vmem:[#allocation9 + $0x7c8] ss:$16 sps:$4 sm:$0xff]   ;;  %v4977_v60 = vld [vmem:[#allocation9 + $0x5ac] ss:$16 sps:$4 sm:$0xff]  }
 0x1b5   :  { %3299 = vmatprep.subr.bf16.mxu1 %v4908_v61  ;;  %v4980_v61 = vld [vmem:[#allocation9 + $0x7ac] ss:$16 sps:$4 sm:$0xff]  }
 0x1b7   :  { %3259 = vmatpush2.bf16.msra.mxu0 %v4903_v63  ;;  %v4975_v63 = vld [vmem:[#allocation9 + $0x5a8] ss:$16 sps:$4 sm:$0xff]  }
 0x1b8   :  { %3300 = vmatpush2.bf16.msra.mxu1 %v4906_v0  ;;  %3260 = vmatprep.subr.bf16.mxu0 %v4911_v2  ;;  %v4978_v0 = vld [vmem:[#allocation9 + $0x7a8] ss:$16 sps:$4 sm:$0xff]   ;;  %v4983_v2 = vld [vmem:[#allocation9 + $0x58c] ss:$16 sps:$4 sm:$0xff]  }
 0x1b9   :  { %3301 = vmatprep.subr.bf16.mxu1 %v4914_v35  ;;  %v4986_v35 = vld [vmem:[#allocation9 + $0x78c] ss:$16 sps:$4 sm:$0xff]  }
 0x1bb   :  { %3261 = vmatpush2.bf16.msra.mxu0 %v4909_v3  ;;  %v4981_v3 = vld [vmem:[#allocation9 + $0x588] ss:$16 sps:$4 sm:$0xff]  }
 0x1bc   :  { %3302 = vmatpush2.bf16.msra.mxu1 %v4912_v4  ;;  %3312 = vmatprep.subr.bf16.mxu0 %v4917_v5  ;;  %v4984_v4 = vld [vmem:[#allocation9 + $0x788] ss:$16 sps:$4 sm:$0xff]   ;;  %v4989_v5 = vld [vmem:[#allocation9 + $0x56c] ss:$16 sps:$4 sm:$0xff]  }
 0x1bd   :  { %3353 = vmatprep.subr.bf16.mxu1 %v4920_v6  ;;  %v4992_v6 = vld [vmem:[#allocation9 + $0x76c] ss:$16 sps:$4 sm:$0xff]  }
 0x1be   :  { %v1458_v25 = vpop.f32.mrf.mxu0  ;;  %3263 = vmatmul.mubr.bf16.vlgmr.msra.gmra.mxu0 %v5266_v8 }
 0x1bf   :  { %v1499_v26 = vpop.f32.mrf.mxu1  ;;  %3304 = vmatmul.mubr.bf16.vlgmr.msra.gmra.mxu1 %v5268_v28  ;;  %v1459_v12 = vadd.f32 %v1458_v25, %v5286_v58  ;;  %3313 = vmatpush1.bf16.msra.mxu0 %v4915_v7  ;;  %v4987_v7 = vld [vmem:[#allocation9 + $0x568] ss:$16 sps:$4 sm:$0xff]  }
 0x1c0   :  { %3354 = vmatpush1.bf16.msra.mxu1 %v4918_v10  ;;  %v1460_v15 = vpop.f32.mrf.mxu0  ;;  %3314 = vmatprep.subr.bf16.mxu0 %v4923_v42  ;;  %v4990_v10 = vld [vmem:[#allocation9 + $0x768] ss:$16 sps:$4 sm:$0xff]   ;;  %v4995_v42 = vld [vmem:[#allocation9 + $0x54c] ss:$16 sps:$4 sm:$0xff]  }
 0x1c1   :  { %v1501_v17 = vpop.f32.mrf.mxu1  ;;  %3355 = vmatprep.subr.bf16.mxu1 %v4926_v11  ;;  %v5303_v20 = vadd.f32 %v1499_v26, %v1459_v12  ;;  %v1461_v21 = vadd.f32 %v1460_v15, %v5293_v62  ;;  %3344 = vmatprep.mubr.bf16.mxu0 %v5270_v52  ;;  %v4933_v62 = vld [vmem:[#allocation9 + $0x488] ss:$16 sps:$4 sm:$0xff]   ;;  %v4998_v11 = vld [vmem:[#allocation9 + $0x74c] ss:$16 sps:$4 sm:$0xff]  }
 0x1c2   :  { %3385 = vmatprep.mubr.bf16.mxu1 %v5272_v32  ;;  %v1462_v8 = vpop.f32.mrf.mxu0  ;;  %v4936_v52 = vld [vmem:[#allocation9 + $0x688] ss:$16 sps:$4 sm:$0xff]   ;;  %v4941_v32 = vld [vmem:[#allocation9 + $0x46c] ss:$16 sps:$4 sm:$0xff]  }
 0x1c3   :  { %v1503_v28 = vpop.f32.mrf.mxu1  ;;  %v5308_v58 = vadd.f32 %v1501_v17, %v1461_v21  ;;  %3315 = vmatpush1.bf16.msra.mxu0 %v4921_v13  ;;  %v4993_v25 = vld [vmem:[#allocation9 + $0x548] ss:$16 sps:$4 sm:$0xff]   ;;  %v5001_v12 = vld [vmem:[#allocation9 + $0x52c] ss:$16 sps:$4 sm:$0xff]  }
 0x1c4   :  { %3356 = vmatpush1.bf16.msra.mxu1 %v4924_v14  ;;  %v1463_v24 = vpop.f32.mrf.mxu0  ;;  %3316 = vmatprep.subr.bf16.mxu0 %v4929_v18  ;;  %v4996_v26 = vld [vmem:[#allocation9 + $0x748] ss:$16 sps:$4 sm:$0xff]   ;;  %v5004_v13 = vld [vmem:[#allocation9 + $0x72c] ss:$16 sps:$4 sm:$0xff]  }
 0x1c5   :  { %v1504_v27 = vpop.f32.mrf.mxu1  ;;  %3357 = vmatprep.subr.bf16.mxu1 %v4932_v19  ;;  %v4999_v14 = vld [vmem:[#allocation9 + $0x528] ss:$16 sps:$4 sm:$0xff]   ;;  %v5007_v17 = vld [vmem:[#allocation9 + $0x50c] ss:$16 sps:$4 sm:$0xff]  }
 0x1c6   :  { %v5002_v15 = vld [vmem:[#allocation9 + $0x728] ss:$16 sps:$4 sm:$0xff]   ;;  %v5010_v18 = vld [vmem:[#allocation9 + $0x70c] ss:$16 sps:$4 sm:$0xff]  }
 0x1c7   :  { %3317 = vmatpush1.bf16.msra.mxu0 %v4927_v22  ;;  %v5005_v19 = vld [vmem:[#allocation9 + $0x508] ss:$16 sps:$4 sm:$0xff]   ;;  %v5013_v22 = vld [vmem:[#allocation11 + $0x70] sm:$0xff]  }
 0x1c8   :  { %3358 = vmatpush1.bf16.msra.mxu1 %v4930_v23  ;;  %3318 = vmatprep.subr.bf16.mxu0 %v4935_v29  ;;  %v5008_v21 = vld [vmem:[#allocation9 + $0x708] ss:$16 sps:$4 sm:$0xff]   ;;  %v5014_v29 = vld [vmem:[#allocation11 + $0x30] sm:$0xff]  }
 0x1c9   :  { %3359 = vmatprep.subr.bf16.mxu1 %v4938_v30  ;;  %v5011_v8 = vld [vmem:[#allocation11 + $0x78] sm:$0xff]  }
 0x1ca   :  { %v5012_v28 = vld [vmem:[#allocation11 + $0x38] sm:$0xff]  }
 0x1cb   :  { %3319 = vmatpush1.bf16.msra.mxu0 %v4933_v62 }
 0x1cc   :  { %3360 = vmatpush1.bf16.msra.mxu1 %v4936_v52  ;;  %3320 = vmatprep.subr.bf16.mxu0 %v4941_v32  ;;  %v5015_v52 = vld [vmem:[#allocation11 + $0x68] sm:$0xff]  }
 0x1cd   :  { %3361 = vmatprep.subr.bf16.mxu1 %v4944_v31 }
 0x1cf   :  { %3321 = vmatpush1.bf16.msra.mxu0 %v4939_v9  ;;  %v5016_v9 = vld [vmem:[#allocation11 + $0x28] sm:$0xff]  }
 0x1d0   :  { %3362 = vmatpush1.bf16.msra.mxu1 %v4942_v16  ;;  %3322 = vmatprep.subr.bf16.mxu0 %v4947_v33  ;;  %v5017_v16 = vld [vmem:[#allocation11 + $0x60] sm:$0xff]  }
 0x1d1   :  { %3363 = vmatprep.subr.bf16.mxu1 %v4950_v34 }
 0x1d3   :  { %3323 = vmatpush1.bf16.msra.mxu0 %v4945_v36  ;;  %v5027_v36 = vld [vmem:[#allocation11 + $0xf8] sm:$0xff]  }
 0x1d4   :  { %3364 = vmatpush1.bf16.msra.mxu1 %v4948_v37  ;;  %3324 = vmatprep.subr.bf16.mxu0 %v4953_v38  ;;  %v5028_v37 = vld [vmem:[#allocation11 + $0xb8] sm:$0xff]   ;;  %v5030_v38 = vld [vmem:[#allocation11 + $0xb0] sm:$0xff]  }
 0x1d5   :  { %3365 = vmatprep.subr.bf16.mxu1 %v4956_v39  ;;  %v5019_v39 = vld [vmem:[#allocation11 + $0x58] sm:$0xff]  }
 0x1d7   :  { %3325 = vmatpush1.bf16.msra.mxu0 %v4951_v40  ;;  %v5031_v40 = vld [vmem:[#allocation11 + $0xe8] sm:$0xff]  }
 0x1d8   :  { %3366 = vmatpush1.bf16.msra.mxu1 %v4954_v41  ;;  %3326 = vmatprep.subr.bf16.mxu0 %v4959_v43  ;;  %v5020_v41 = vld [vmem:[#allocation11 + $0x18] sm:$0xff]   ;;  %v5032_v43 = vld [vmem:[#allocation11 + $0xa8] sm:$0xff]  }
 0x1d9   :  { %3367 = vmatprep.subr.bf16.mxu1 %v4962_v44  ;;  %v5021_v44 = vld [vmem:[#allocation11 + $0x50] sm:$0xff]  }
 0x1db   :  { %3327 = vmatpush1.bf16.msra.mxu0 %v4957_v45  ;;  %v5033_v45 = vld [vmem:[#allocation11 + $0xe0] sm:$0xff]  }
 0x1dc   :  { %3368 = vmatpush1.bf16.msra.mxu1 %v4960_v46  ;;  %3328 = vmatprep.subr.bf16.mxu0 %v4965_v47  ;;  %v5022_v46 = vld [vmem:[#allocation11 + $0x10] sm:$0xff]   ;;  %v5034_v47 = vld [vmem:[#allocation11 + $0xa0] sm:$0xff]  }
 0x1dd   :  { %3369 = vmatprep.subr.bf16.mxu1 %v4968_v48  ;;  %v5023_v48 = vld [vmem:[#allocation11 + $0x48] sm:$0xff]  }
 0x1df   :  { %3329 = vmatpush2.bf16.msra.mxu0 %v4963_v49  ;;  %v5024_v49 = vld [vmem:[#allocation11 + $0x8] sm:$0xff]  }
 0x1e0   :  { %3370 = vmatpush2.bf16.msra.mxu1 %v4966_v50  ;;  %3330 = vmatprep.subr.bf16.mxu0 %v4971_v54  ;;  %v5025_v50 = vld [vmem:[#allocation11 + $0x40] sm:$0xff]  }
 0x1e1   :  { %3371 = vmatprep.subr.bf16.mxu1 %v4974_v55  ;;  %v5026_v54 = vld [vmem:[#allocation11] sm:$0xff]   ;;  %v3411_v55 = vlaneseq }
 0x1e3   :  { %3331 = vmatpush2.bf16.msra.mxu0 %v4969_v56  ;;  %v5312_v56 = vshrl.u32 %v3411_v55, 7 }
 0x1e4   :  { %3372 = vmatpush2.bf16.msra.mxu1 %v4972_v57  ;;  %3332 = vmatprep.subr.bf16.mxu0 %v4977_v60  ;;  %v5035_v57 = vld [vmem:[#allocation11 + $0xd8] sm:$0xff]  }
 0x1e5   :  { %3373 = vmatprep.subr.bf16.mxu1 %v4980_v61  ;;  %v3413_v60 = vsub.s32 0, %v5312_v56  ;;  %v5036_v61 = vld [vmem:[#allocation11 + $0x98] sm:$0xff]  }
 0x1e7   :  { %3333 = vmatpush2.bf16.msra.mxu0 %v4975_v63 }
 0x1e8   :  { %3374 = vmatpush2.bf16.msra.mxu1 %v4978_v0  ;;  %3334 = vmatprep.subr.bf16.mxu0 %v4983_v2  ;;  %v5318_v2 = vld [vmem:[%s5341_s4] sm:$0xf] }
 0x1e9   :  { %3375 = vmatprep.subr.bf16.mxu1 %v4986_v35 }
 0x1eb   :  { %3335 = vmatpush2.bf16.msra.mxu0 %v4981_v3 }
 0x1ec   :  { %3376 = vmatpush2.bf16.msra.mxu1 %v4984_v4  ;;  %3336 = vmatprep.subr.bf16.mxu0 %v4989_v5  ;;  %v3417_v4 = vsub.s32 1, %v5312_v56 }
 0x1ed   :  { %3377 = vmatprep.subr.bf16.mxu1 %v4992_v6 }
 0x1ef   :  { %3337 = vmatpush2.bf16.msra.mxu0 %v4987_v7  ;;  %v5037_v7 = vld [vmem:[#allocation11 + $0xd0] sm:$0xff]  }
 0x1f0   :  { %3378 = vmatpush2.bf16.msra.mxu1 %v4990_v10  ;;  %3338 = vmatprep.subr.bf16.mxu0 %v4995_v42  ;;  %v3414_v42 = vrot.slane %v5318_v2, %v3413_v60 }
 0x1f1   :  { %3379 = vmatprep.subr.bf16.mxu1 %v4998_v11 }
 0x1f3   :  { %3339 = vmatpush2.bf16.msra.mxu0 %v4993_v25  ;;  %v5038_v25 = vld [vmem:[#allocation11 + $0x90] sm:$0xff]  }
 0x1f4   :  { %3380 = vmatpush2.bf16.msra.mxu1 %v4996_v26  ;;  %3340 = vmatprep.subr.bf16.mxu0 %v5001_v12 }
 0x1f5   :  { %3381 = vmatprep.subr.bf16.mxu1 %v5004_v13 }
 0x1f7   :  { %3341 = vmatpush2.bf16.msra.mxu0 %v4999_v14 }
 0x1f8   :  { %3382 = vmatpush2.bf16.msra.mxu1 %v5002_v15  ;;  %3342 = vmatprep.subr.bf16.mxu0 %v5007_v17  ;;  %v3418_v15 = vrot.slane %v5318_v2, %v3417_v4 }
 0x1f9   :  { %3383 = vmatprep.subr.bf16.mxu1 %v5010_v18 }
 0x1fb   :  { %3343 = vmatpush2.bf16.msra.mxu0 %v5005_v19  ;;  %v5039_v19 = vld [vmem:[#allocation11 + $0xc8] sm:$0xff]  }
 0x1fc   :  { %3384 = vmatpush2.bf16.msra.mxu1 %v5008_v21  ;;  %4285 = vmatprep.subr.bf16.mxu0 %v5011_v8 }
 0x1fd   :  { %4307 = vmatprep.subr.bf16.mxu1 %v5027_v36  ;;  %v3421_v36 = vsub.s32 2, %v5312_v56 }
 0x1fe   :  { %v3100_v23 = vpop.f32.mrf.mxu0  ;;  %3345 = vmatmul.mubr.bf16.vlgmr.msra.gmra.mxu0 %v5282_v51  ;;  %v5029_v51 = vld [vmem:[#allocation11 + $0xf0] sm:$0xff]  }
 0x1ff   :  { %v3141_v24 = vpop.f32.mrf.mxu1  ;;  %3386 = vmatmul.mubr.bf16.vlgmr.msra.gmra.mxu1 %v5284_v53  ;;  %4286 = vmatpush3.bf16.msra.mxu0 %v5012_v28  ;;  %v5018_v53 = vld [vmem:[#allocation11 + $0x20] sm:$0xff]   ;;  %v5040_v28 = vld [vmem:[#allocation11 + $0x88] sm:$0xff]  }
 0x200   :  { %v3142_v27 = vadd.f32 %v3141_v24, %v3100_v23  ;;  %v3102_v30 = vpop.f32.mrf.mxu0  ;;  %4287 = vmatprep.subr.bf16.mxu0 %v5013_v22  ;;  %4308 = vmatpush3.bf16.msra.mxu1 %v5028_v37  ;;  %v5041_v24 = vld [vmem:[#allocation11 + $0xc0] sm:$0xff]  }
 0x201   :  { %v3143_v62 = vpop.f32.mrf.mxu1  ;;  %4309 = vmatprep.subr.bf16.mxu1 %v5029_v51 }
 0x202   :  { %v3104_v32 = vpop.f32.mrf.mxu0  ;;  %v3144_v35 = vadd.f32 %v3143_v62, %v3102_v30 }
 0x203   :  { %v3145_v31 = vpop.f32.mrf.mxu1  ;;  %4288 = vmatpush3.bf16.msra.mxu0 %v5014_v29  ;;  %v5042_v29 = vld [vmem:[#allocation11 + $0x80] sm:$0xff]  }
 0x204   :  { %v3105_v33 = vpop.f32.mrf.mxu0  ;;  %4289 = vmatprep.subr.bf16.mxu0 %v5015_v52  ;;  %4310 = vmatpush3.bf16.msra.mxu1 %v5030_v38 }
 0x205   :  { %v3146_v34 = vpop.f32.mrf.mxu1  ;;  %4311 = vmatprep.subr.bf16.mxu1 %v5031_v40 }
 0x207   :  { %4290 = vmatpush3.bf16.msra.mxu0 %v5016_v9 }
 0x208   :  { %4291 = vmatprep.subr.bf16.mxu0 %v5017_v16  ;;  %4312 = vmatpush3.bf16.msra.mxu1 %v5032_v43 }
 0x209   :  { %4313 = vmatprep.subr.bf16.mxu1 %v5033_v45 }
 0x20b   :  { %4292 = vmatpush3.bf16.msra.mxu0 %v5018_v53 }
 0x20c   :  { %4293 = vmatprep.subr.bf16.mxu0 %v5019_v39  ;;  %4314 = vmatpush3.bf16.msra.mxu1 %v5034_v47  ;;  %v3425_v39 = vsub.s32 3, %v5312_v56 }
 0x20d   :  { %4315 = vmatprep.subr.bf16.mxu1 %v5035_v57 }
 0x20f   :  { %4294 = vmatpush3.bf16.msra.mxu0 %v5020_v41 }
 0x210   :  { %4295 = vmatprep.subr.bf16.mxu0 %v5021_v44  ;;  %4316 = vmatpush3.bf16.msra.mxu1 %v5036_v61  ;;  %v3422_v44 = vrot.slane %v5318_v2, %v3421_v36 }
 0x211   :  { %4317 = vmatprep.subr.bf16.mxu1 %v5037_v7 }
 0x213   :  { %4296 = vmatpush3.bf16.msra.mxu0 %v5022_v46 }
 0x214   :  { %4297 = vmatprep.subr.bf16.mxu0 %v5023_v48  ;;  %4318 = vmatpush3.bf16.msra.mxu1 %v5038_v25 }
 0x215   :  { %4319 = vmatprep.subr.bf16.mxu1 %v5039_v19 }
 0x217   :  { %4298 = vmatpush3.bf16.msra.mxu0 %v5024_v49 }
 0x218   :  { %4299 = vmatprep.subr.bf16.mxu0 %v5025_v50  ;;  %4320 = vmatpush3.bf16.msra.mxu1 %v5040_v28  ;;  %v3426_v50 = vrot.slane %v5318_v2, %v3425_v39  ;;  %v4252_v2 = vld [vmem:[%s5343_s6] ss:$0 sm:$0xff] }
 0x219   :  { %4321 = vmatprep.subr.bf16.mxu1 %v5041_v24 }
 0x21b   :  { %4300 = vmatpush3.bf16.msra.mxu0 %v5026_v54 }
 0x21c   :  { %4322 = vmatpush3.bf16.msra.mxu1 %v5042_v29 }
 0x23e   :  { %v3182_v63 = vpop.f32.mrf.mxu0 }
 0x23f   :  { %v3223_v0 = vpop.f32.mrf.mxu1  ;;  %v3183_v3 = vadd.f32 %v3182_v63, %v3142_v27 }
 0x240   :  { %v3184_v5 = vpop.f32.mrf.mxu0 }
 0x241   :  { %v3225_v6 = vpop.f32.mrf.mxu1  ;;  %v3224_v10 = vadd.f32 %v3223_v0, %v3183_v3  ;;  %v3185_v11 = vadd.f32 %v3184_v5, %v3144_v35 }
 0x242   :  { %v3186_v26 = vpop.f32.mrf.mxu0 }
 0x243   :  { %v3227_v12 = vpop.f32.mrf.mxu1  ;;  %v3394_v13 = vadd.f32 %v3224_v10, %v5291_v59  ;;  %v3226_v14 = vadd.f32 %v3225_v6, %v3185_v11 }
 0x244   :  { %v3187_v17 = vpop.f32.mrf.mxu0 }
 0x245   :  { %v3228_v18 = vpop.f32.mrf.mxu1  ;;  %v3431_v21 = vadd.f32 %v3414_v42, %v3394_v13  ;;  %v3395_v8 = vadd.f32 %v3226_v14, %v5296_v1 }
 0x247   :  { %v3432_v22 = vadd.f32 %v3418_v15, %v3395_v8  ;;  %v3435_v23 = vmax.f32 %v3431_v21, 0.0 }
 0x249   :  { %v3436_v27 = vmax.f32 %v3432_v22, 0.0  ;;  %v3439_v30 = vpack.c.bf16 %v3435_v23, %v3435_v23 }
 0x24b   :  { %v3440_v59 = vpack.c.bf16 %v3436_v27, %v3436_v27 }
 0x24d   :  { %3738 = vmatprep.mubr.bf16.mxu0 %v3440_v59 }
 0x24e   :  { %3739 = vmatmul.mubr.bf16.vlgmr.msra.gmra.mxu0 %v3439_v30 }
 0x27e   :  { %v3264_v62 = vpop.f32.mrf.mxu0 }
 0x27f   :  { %v3305_v52 = vpop.f32.mrf.mxu1 }
 0x280   :  { %v3306_v32 = vadd.f32 %v3305_v52, %v3264_v62  ;;  %v3266_v31 = vpop.f32.mrf.mxu0 }
 0x281   :  { %v3307_v9 = vpop.f32.mrf.mxu1 }
 0x282   :  { %v3268_v1 = vpop.f32.mrf.mxu0  ;;  %v3308_v53 = vadd.f32 %v3307_v9, %v3266_v31 }
 0x283   :  { %v3309_v16 = vpop.f32.mrf.mxu1 }
 0x284   :  { %v3269_v33 = vpop.f32.mrf.mxu0 }
 0x285   :  { %v3310_v34 = vpop.f32.mrf.mxu1 }
 0x2be   :  { %v3346_v37 = vpop.f32.mrf.mxu0 }
 0x2bf   :  { %v3387_v51 = vpop.f32.mrf.mxu1  ;;  %v3347_v38 = vadd.f32 %v3346_v37, %v3306_v32 }
 0x2c0   :  { %v3348_v40 = vpop.f32.mrf.mxu0 }
 0x2c1   :  { %v3389_v41 = vpop.f32.mrf.mxu1  ;;  %v3388_v43 = vadd.f32 %v3387_v51, %v3347_v38  ;;  %v3349_v45 = vadd.f32 %v3348_v40, %v3308_v53 }
 0x2c2   :  { %v3350_v46 = vpop.f32.mrf.mxu0 }
 0x2c3   :  { %v3391_v47 = vpop.f32.mrf.mxu1  ;;  %v3396_v48 = vadd.f32 %v3388_v43, %v5303_v20  ;;  %v3390_v49 = vadd.f32 %v3389_v41, %v3349_v45 }
 0x2c4   :  { %v3351_v54 = vpop.f32.mrf.mxu0 }
 0x2c5   :  { %v3392_v55 = vpop.f32.mrf.mxu1  ;;  %v3433_v57 = vadd.f32 %v3422_v44, %v3396_v48  ;;  %v3397_v60 = vadd.f32 %v3390_v49, %v5308_v58 }
 0x2c7   :  { %v3434_v61 = vadd.f32 %v3426_v50, %v3397_v60  ;;  %v3437_v56 = vmax.f32 %v3433_v57, 0.0 }
 0x2c9   :  { %v3438_v63 = vmax.f32 %v3434_v61, 0.0  ;;  %v3441_v35 = vpack.c.bf16 %v3437_v56, %v3437_v56 }
 0x2cb   :  { %v3442_v0 = vpack.c.bf16 %v3438_v63, %v3438_v63 }
 0x2cd   :  { %3778 = vmatprep.mubr.bf16.mxu1 %v3442_v0 }
 0x2ce   :  { %3779 = vmatmul.mubr.bf16.vlgmr.msra.gmra.mxu1 %v3441_v35 }
 0x30e   :  { %v4301_v3 = vpop.f32.mrf.mxu0 }
 0x310   :  { %v4302_v4 = vpop.f32.mrf.mxu0 }
 0x311   :  { %v4303_v5 = vadd.f32 %v4302_v4, %v4301_v3 }
 0x312   :  { %v4304_v6 = vpop.f32.mrf.mxu0 }
 0x313   :  { %v3741_v58 = vadd.f32 %v4303_v5, %v4252_v2 }
 0x314   :  { %v4305_v20 = vpop.f32.mrf.mxu0 }
 0x38e   :  { %v4323_v7 = vpop.f32.mrf.mxu1 }
 0x390   :  { %v4324_v10 = vpop.f32.mrf.mxu1 }
 0x391   :  { %v4325_v42 = vadd.f32 %v4324_v10, %v4323_v7 }
 0x392   :  { %v4326_v11 = vpop.f32.mrf.mxu1 }
 0x393   :  { %v3781_v25 = vadd.f32 %v4325_v42, %v3741_v58 }
 0x394   :  { %v4327_v26 = vpop.f32.mrf.mxu1 }
 0x395   :  { %3786 = vst [vmem:[#allocation12] sm:$0xff] %v3781_v25 }
 0x396   :  { %5154 = shalt.err (!%p5151_p1)
}
 0x397   :  { %3796 = dma.vmem_to_hbm [thread:$0]  %s3794_s29, 128, %s5344_s7, [#allocation5]  }
 0x398   :  { %5169 = dma.done.wait [#allocation5], 128  }
 0x399   :  { %5170 = vsyncadd [#allocation5], 4294967168 }
 0x39a   :  { %3800 = vsyncpa [#allocation4], 1 }
 0x39b   :  { %3801 = vsyncpa [#allocation7], 1 }
 0x39c   :  { %3802 = vsyncpa [#allocation10], 1 }
 0x39d   :  { %3803 = vsyncpa [#allocation5], 1 }

</bundles_post_ra>
